<compile_context>
chip_gen: v5e
topology: v5e:2x2
jax: 0.10.0
libtpu: 0.0.40
codegen_flags: <defaults>
</compile_context>

<pallas_src>
import numpy as np
import jax
import jax.numpy as jnp
from jax.experimental import pallas as pl
from jax.experimental.pallas import tpu as pltpu


def _pick_row_tile(n, row_bytes, budget_bytes=16 * 1024 * 1024):
    """Largest multiple-of-128 divisor of n (<= min(512, n//2)) whose double-buffered
    A row tile fits the VMEM budget; falls back to n (single full-array block)."""
    cap = min(512, max(128, n // 2))
    best = None
    t = 128
    while t <= min(n, cap):
        if n % t == 0 and 2 * t * row_bytes <= budget_bytes:
            best = t
        t += 128
    return best if best is not None else n


def dgi_forward(a_norm, x1, x2, w, b, alpha, w_bil, b_bil, *, compute_dtype=jnp.bfloat16):
    n, n_in = x1.shape
    n_h = w.shape[1]
    assert a_norm.shape == (n, n), "adjacency must be (N, N)"
    assert n % 8 == 0 and n_h % 8 == 0, "node count / hidden dim must be multiples of 8"

    f32 = jnp.float32
    cdt = jnp.dtype(compute_dtype)
    two_nh = 2 * n_h

    tm = _pick_row_tile(n, n * cdt.itemsize)
    num_tiles = n // tm

    # ---- parameter prep (wrapper-side layout plumbing only) ----
    a_c = a_norm.astype(cdt)                                                    # streamed operand
    x1_c = x1.astype(cdt)
    x2_c = x2.astype(cdt)
    w_c = w.astype(cdt)
    b12 = jnp.concatenate([jnp.reshape(b, (1, n_h))] * 2, axis=1).astype(f32)   # (1, 2*n_h)
    alpha_s = jnp.reshape(alpha, (1,)).astype(f32)                              # PReLU slope -> SMEM
    wbil_t = jnp.transpose(w_bil).astype(f32)                                   # pre-transposed W_bil
    bbil_s = jnp.reshape(b_bil, (1,)).astype(f32)                               # bilinear bias -> SMEM

    # ================= Kernel A: XW12 = [X1 @ W | X2 @ W] =================
    def xw_kernel(x1_ref, x2_ref, w_ref, xw_ref):
        wv = w_ref[...]
        xw1 = jnp.dot(x1_ref[...], wv, preferred_element_type=f32)
        xw2 = jnp.dot(x2_ref[...], wv, preferred_element_type=f32)
        xw_ref[...] = jnp.concatenate([xw1, xw2], axis=1).astype(xw_ref.dtype)

    xw12 = pl.pallas_call(
        xw_kernel,
        out_shape=jax.ShapeDtypeStruct((n, two_nh), cdt),
        grid=(num_tiles,),
        in_specs=[
            pl.BlockSpec((tm, n_in), lambda i: (i, 0)),
            pl.BlockSpec((tm, n_in), lambda i: (i, 0)),
            pl.BlockSpec((n_in, n_h), lambda i: (0, 0)),
        ],
        out_specs=pl.BlockSpec((tm, two_nh), lambda i: (i, 0)),
        compiler_params=pltpu.CompilerParams(dimension_semantics=("parallel",)),
        cost_estimate=pl.CostEstimate(
            flops=4 * n * n_in * n_h, transcendentals=0,
            bytes_accessed=(2 * n * n_in + n_in * n_h + n * two_nh) * cdt.itemsize),
    )(x1_c, x2_c, w_c)

    # ===== Kernel B: H12^T = PReLU(A @ XW12 + b)^T + partial column sums of h1 =====
    def gcn_kernel(alpha_ref, a_ref, xw_ref, b_ref, ht_ref, csum_ref):
        h = jnp.dot(a_ref[...], xw_ref[...], preferred_element_type=f32)   # (tm, 2*n_h) f32 acc
        h = h + b_ref[...]
        slope = alpha_ref[0]
        h = jnp.where(h > 0, h, slope * h)                                 # PReLU
        # partial column sum of h_1 (first n_h lanes) for the AvgReadout, sublane-padded to 8
        part = jnp.sum(h[:, :n_h], axis=0, keepdims=True)                  # (1, n_h)
        csum_ref[...] = jnp.broadcast_to(part, (8, n_h))
        # store transposed so the discriminator scores are produced lane-dense
        ht_ref[...] = jnp.transpose(h)                                     # (2*n_h, tm)

    vmem_est = (2 * tm * n * cdt.itemsize          # double-buffered A row tile
                + 2 * n * two_nh * cdt.itemsize    # resident XW12 (conservatively x2)
                + 2 * two_nh * tm * 4              # H^T output tile (double-buffered)
                + 2 * 8 * n_h * 4 + two_nh * 4 + (4 << 20))
    vmem_limit = int(min(56 * 1024 * 1024, max(32 * 1024 * 1024, vmem_est)))

    h12_t, csum = pl.pallas_call(
        gcn_kernel,
        out_shape=(jax.ShapeDtypeStruct((two_nh, n), f32),
                   jax.ShapeDtypeStruct((8 * num_tiles, n_h), f32)),
        grid=(num_tiles,),
        in_specs=[
            pl.BlockSpec(memory_space=pltpu.MemorySpace.SMEM),     # PReLU slope (scalar)
            pl.BlockSpec((tm, n), lambda i: (i, 0)),               # A row tile (dominant stream)
            pl.BlockSpec((n, two_nh), lambda i: (0, 0)),           # XW12 resident
            pl.BlockSpec((1, two_nh), lambda i: (0, 0)),           # bias
        ],
        out_specs=(pl.BlockSpec((two_nh, tm), lambda i: (0, i)),
                   pl.BlockSpec((8, n_h), lambda i: (i, 0))),
        compiler_params=pltpu.CompilerParams(
            dimension_semantics=("parallel",),
            vmem_limit_bytes=vmem_limit),
        cost_estimate=pl.CostEstimate(
            flops=4 * n * n * n_h, transcendentals=0,
            bytes_accessed=(n * n + n * two_nh) * cdt.itemsize + n * two_nh * 4),
    )(alpha_s, a_c, xw12, b12)

    # ========= Kernel C: readout + folded bilinear discriminator (lane-dense logits) =========
    inv_count = 1.0 / (8.0 * float(n))   # undo the 8x sublane broadcast and divide by node count

    def disc_kernel(bbil_ref, csum_ref, wbilt_ref, ht_ref, out_ref):
        # s / v are tiny; recomputed per tile so the node axis stays megacore-parallel
        s = jax.nn.sigmoid(jnp.sum(csum_ref[...], axis=0, keepdims=True) * inv_count)  # (1, n_h)
        v = jnp.dot(s, wbilt_ref[...], preferred_element_type=f32)                     # (1, n_h) == (W_bil @ s)^T
        ht = ht_ref[...]                                                               # (2*n_h, tm)
        sc1 = jnp.dot(v, ht[:n_h, :], preferred_element_type=f32)                      # (1, tm)
        sc2 = jnp.dot(v, ht[n_h:, :], preferred_element_type=f32)                      # (1, tm)
        out_ref[...] = jnp.concatenate([sc1, sc2], axis=0) + bbil_ref[0]               # (2, tm)

    logits2 = pl.pallas_call(
        disc_kernel,
        out_shape=jax.ShapeDtypeStruct((2, n), f32),
        grid=(num_tiles,),
        in_specs=[
            pl.BlockSpec(memory_space=pltpu.MemorySpace.SMEM),       # bilinear bias (scalar)
            pl.BlockSpec((8 * num_tiles, n_h), lambda i: (0, 0)),    # partial colsums (resident)
            pl.BlockSpec((n_h, n_h), lambda i: (0, 0)),              # W_bil^T (resident)
            pl.BlockSpec((two_nh, tm), lambda i: (0, i)),            # H^T tile
        ],
        out_specs=pl.BlockSpec((2, tm), lambda i: (0, i)),
        compiler_params=pltpu.CompilerParams(dimension_semantics=("parallel",)),
        cost_estimate=pl.CostEstimate(
            flops=2 * num_tiles * n_h * n_h + 4 * n * n_h,
            transcendentals=num_tiles * n_h,
            bytes_accessed=n * two_nh * 4 + n_h * n_h * 4 + 2 * n * 4),
    )(bbil_s, csum, wbil_t, h12_t)

    # row-major reshape gives torch.cat((sc_1, sc_2)) ordering
    return logits2.reshape(-1)


def build_norm_adj(edge_index, num_nodes):
    """GCNConv propagation matrix D^{-1/2}(A+I)D^{-1/2} (dense; plain JAX glue).
    Assumes edge_index carries no explicit self-loops (they are added here)."""
    src, dst = edge_index[0], edge_index[1]
    a = jnp.zeros((num_nodes, num_nodes), jnp.float32).at[dst, src].set(1.0)
    a = a + jnp.eye(num_nodes, dtype=jnp.float32)
    deg = a.sum(axis=1)
    dinv = 1.0 / jnp.sqrt(deg)
    return a * dinv[:, None] * dinv[None, :]


def ref_forward_np(a, x1, x2, w, b, alpha, w_bil, b_bil):
    """float64 numpy reference of the DGI forward."""
    a = np.asarray(a, np.float64)
    x1 = np.asarray(x1, np.float64)
    x2 = np.asarray(x2, np.float64)
    w = np.asarray(w, np.float64)
    b = np.asarray(b, np.float64).reshape(1, -1)
    w_bil = np.asarray(w_bil, np.float64)
    alpha = float(alpha)
    b_bil = float(b_bil)

    def gcn(x):
        h = a @ (x @ w) + b
        return np.where(h > 0, h, alpha * h)

    h1, h2 = gcn(x1), gcn(x2)
    s = 1.0 / (1.0 + np.exp(-h1.mean(axis=0, keepdims=True)))
    v = s @ w_bil.T
    sc1 = (h1 * v).sum(axis=1) + b_bil
    sc2 = (h2 * v).sum(axis=1) + b_bil
    return np.concatenate([sc1, sc2])


if __name__ == "__main__":
    N, n_in, n_h = 256, 32, 64

    key = jax.random.PRNGKey(0)
    k1, k2, k3, k4, k5 = jax.random.split(key, 5)

    # node features; corrupted features seq2 = row-shuffled seq1 (standard DGI corruption)
    seq1 = jax.random.normal(k1, (N, n_in), jnp.float32)
    seq2 = seq1[jax.random.permutation(k2, N)]

    # toy undirected ring graph
    idx = jnp.arange(N)
    edge_index = jnp.concatenate(
        [jnp.stack([idx, (idx + 1) % N]), jnp.stack([(idx + 1) % N, idx])], axis=1)
    a_norm = build_norm_adj(edge_index, N)

    # deterministic parameter init (shapes from the module __init__; not a checkpoint load)
    w_gcn = jax.random.normal(k3, (n_in, n_h), jnp.float32) * (1.0 / np.sqrt(n_in))
    b_gcn = 0.05 * jax.random.normal(k5, (n_h,), jnp.float32)       # GCNConv bias
    alpha = jnp.float32(0.25)                                       # PReLU default slope
    w_bil = jax.random.normal(k4, (n_h, n_h), jnp.float32) * (1.0 / np.sqrt(n_h))
    b_bil = jnp.float32(0.1)                                        # Bilinear bias

    dgi = jax.jit(dgi_forward, static_argnames=("compute_dtype",))

    ref = jnp.asarray(ref_forward_np(a_norm, seq1, seq2, w_gcn, b_gcn, 0.25, w_bil, 0.1),
                      jnp.float32)

    # f32 everywhere: tight structural-correctness check
    out_f32 = dgi(a_norm, seq1, seq2, w_gcn, b_gcn, alpha, w_bil, b_bil,
                  compute_dtype=jnp.float32)
    jax.block_until_ready(out_f32)
    assert out_f32.shape == (2 * N,)
    assert jnp.allclose(out_f32, ref, atol=2e-3, rtol=2e-3), (out_f32[:8], ref[:8])

    # default perf path: bf16 adjacency / feature streaming with f32 MXU accumulation
    out_bf16 = dgi(a_norm, seq1, seq2, w_gcn, b_gcn, alpha, w_bil, b_bil,
                   compute_dtype=jnp.bfloat16)
    jax.block_until_ready(out_bf16)
    assert out_bf16.shape == (2 * N,)
    assert jnp.allclose(out_bf16, ref, atol=1e-1, rtol=1e-1), (out_bf16[:8], ref[:8])

    print("KERNEL_OK")
</pallas_src>

<mosaic_0001>
module attributes {stable_mosaic.version = 11 : i64} {
  func.func @xw_kernel(%arg0: i32, %arg1: memref<128x32xf32, #tpu.memory_space<vmem>>, %arg2: memref<128x32xf32, #tpu.memory_space<vmem>>, %arg3: memref<32x64xf32, #tpu.memory_space<vmem>>, %arg4: memref<128x128xf32, #tpu.memory_space<vmem>>) attributes {dimension_semantics = [#tpu.dimension_semantics<parallel>], iteration_bounds = array<i64: 2>, scalar_prefetch = 0 : i64, scratch_operands = 0 : i64, tpu.core_type = #tpu.core_type<tc>, window_params = [{transform_indices = @transform_0, window_bounds = array<i64: 128, 32>}, {transform_indices = @transform_1, window_bounds = array<i64: 128, 32>}, {pipeline_mode = #tpu.pipeline_mode<synchronous>, transform_indices = @transform_2, window_bounds = array<i64: 32, 64>}, {transform_indices = @transform_3, window_bounds = array<i64: 128, 128>}]} {
    %c0 = arith.constant 0 : index
    %c0_0 = arith.constant 0 : index
    %0 = vector.load %arg3[%c0, %c0_0] : memref<32x64xf32, #tpu.memory_space<vmem>>, vector<32x64xf32>
    %c0_1 = arith.constant 0 : index
    %c0_2 = arith.constant 0 : index
    %1 = vector.load %arg1[%c0_1, %c0_2] : memref<128x32xf32, #tpu.memory_space<vmem>>, vector<128x32xf32>
    %cst = arith.constant dense<0.000000e+00> : vector<128x64xf32>
    %2 = tpu.matmul %1, %0, %cst {dimension_numbers = #tpu.dot_dimension_numbers<[1], [0], [0], [1], [0, 0, 1, 1], [], []>} : vector<128x32xf32>, vector<32x64xf32>, vector<128x64xf32> -> vector<128x64xf32>
    %c0_3 = arith.constant 0 : index
    %c0_4 = arith.constant 0 : index
    %3 = vector.load %arg2[%c0_3, %c0_4] : memref<128x32xf32, #tpu.memory_space<vmem>>, vector<128x32xf32>
    %cst_5 = arith.constant dense<0.000000e+00> : vector<128x64xf32>
    %4 = tpu.matmul %3, %0, %cst_5 {dimension_numbers = #tpu.dot_dimension_numbers<[1], [0], [0], [1], [0, 0, 1, 1], [], []>} : vector<128x32xf32>, vector<32x64xf32>, vector<128x64xf32> -> vector<128x64xf32>
    %5 = tpu.concatenate %2, %4 in 1 : vector<128x64xf32>, vector<128x64xf32> -> vector<128x128xf32>
    %c0_6 = arith.constant 0 : index
    %c0_7 = arith.constant 0 : index
    %6 = vector.load %arg4[%c0_6, %c0_7] : memref<128x128xf32, #tpu.memory_space<vmem>>, vector<128x128xf32>
    tpu.vector_store %arg4[%c0_6, %c0_7], %5 {strides = array<i32>} : memref<128x128xf32, #tpu.memory_space<vmem>>, vector<128x128xf32>,
    return
  }
  func.func @transform_0(%arg0: i32) -> (i32, i32) {
    %c0_i32 = arith.constant 0 : i32
    %c0_i32_0 = arith.constant 0 : i32
    return %arg0, %c0_i32 : i32, i32
  }
  func.func @transform_1(%arg0: i32) -> (i32, i32) {
    %c0_i32 = arith.constant 0 : i32
    %c0_i32_0 = arith.constant 0 : i32
    return %arg0, %c0_i32 : i32, i32
  }
  func.func @transform_2(%arg0: i32) -> (i32, i32) {
    %c0_i32 = arith.constant 0 : i32
    %c0_i32_0 = arith.constant 0 : i32
    %c0_i32_1 = arith.constant 0 : i32
    return %c0_i32, %c0_i32_0 : i32, i32
  }
  func.func @transform_3(%arg0: i32) -> (i32, i32) {
    %c0_i32 = arith.constant 0 : i32
    %c0_i32_0 = arith.constant 0 : i32
    return %arg0, %c0_i32 : i32, i32
  }
}

module attributes {stable_mosaic.version = 11 : i64} {
  func.func @gcn_kernel(%arg0: i32, %arg1: memref<1xf32, #tpu.memory_space<smem>>, %arg2: memref<128x256xf32, #tpu.memory_space<vmem>>, %arg3: memref<256x128xf32, #tpu.memory_space<vmem>>, %arg4: memref<1x128xf32, #tpu.memory_space<vmem>>, %arg5: memref<128x128xf32, #tpu.memory_space<vmem>>, %arg6: memref<8x64xf32, #tpu.memory_space<vmem>>) attributes {dimension_semantics = [#tpu.dimension_semantics<parallel>], iteration_bounds = array<i64: 2>, scalar_prefetch = 0 : i64, scratch_operands = 0 : i64, tpu.core_type = #tpu.core_type<tc>, window_params = [{transform_indices = @transform_0, window_bounds = array<i64: 1>}, {transform_indices = @transform_1, window_bounds = array<i64: 128, 256>}, {pipeline_mode = #tpu.pipeline_mode<synchronous>, transform_indices = @transform_2, window_bounds = array<i64: 256, 128>}, {pipeline_mode = #tpu.pipeline_mode<synchronous>, transform_indices = @transform_3, window_bounds = array<i64: 1, 128>}, {transform_indices = @transform_4, window_bounds = array<i64: 128, 128>}, {transform_indices = @transform_5, window_bounds = array<i64: 8, 64>}]} {
    %c0 = arith.constant 0 : index
    %c0_0 = arith.constant 0 : index
    %0 = vector.load %arg2[%c0, %c0_0] : memref<128x256xf32, #tpu.memory_space<vmem>>, vector<128x256xf32>
    %c0_1 = arith.constant 0 : index
    %c0_2 = arith.constant 0 : index
    %1 = vector.load %arg3[%c0_1, %c0_2] : memref<256x128xf32, #tpu.memory_space<vmem>>, vector<256x128xf32>
    %cst = arith.constant dense<0.000000e+00> : vector<128x128xf32>
    %2 = tpu.matmul %0, %1, %cst {dimension_numbers = #tpu.dot_dimension_numbers<[1], [0], [0], [1], [0, 0, 1, 1], [], []>} : vector<128x256xf32>, vector<256x128xf32>, vector<128x128xf32> -> vector<128x128xf32>
    %c0_3 = arith.constant 0 : index
    %c0_4 = arith.constant 0 : index
    %3 = vector.load %arg4[%c0_3, %c0_4] : memref<1x128xf32, #tpu.memory_space<vmem>>, vector<1x128xf32>
    %4 = vector.broadcast %3 : vector<1x128xf32> to vector<128x128xf32>
    %5 = arith.addf %2, %4 : vector<128x128xf32>
    %c0_5 = arith.constant 0 : index
    %6 = memref.load %arg1[%c0_5] : memref<1xf32, #tpu.memory_space<smem>>
    %cst_6 = arith.constant 0.000000e+00 : f32
    %7 = vector.broadcast %cst_6 : f32 to vector<128x128xf32>
    %8 = arith.cmpf ogt, %5, %7 : vector<128x128xf32>
    %9 = vector.broadcast %6 : f32 to vector<128x128xf32>
    %10 = arith.mulf %9, %5 : vector<128x128xf32>
    %11 = arith.select %8, %5, %10 : vector<128x128xi1>, vector<128x128xf32>
    %12 = vector.extract_strided_slice %11 {offsets = [0, 0], sizes = [128, 64], strides = [1, 1]} : vector<128x128xf32> to vector<128x64xf32>
    %cst_7 = arith.constant dense<0.000000e+00> : vector<64xf32>
    %13 = vector.multi_reduction <add>, %12, %cst_7 [0] : vector<128x64xf32> to vector<64xf32>
    %14 = vector.shape_cast %13 : vector<64xf32> to vector<1x64xf32>
    %15 = vector.shape_cast %14 : vector<1x64xf32> to vector<1x64xf32>
    %16 = vector.broadcast %15 : vector<1x64xf32> to vector<8x64xf32>
    %c0_8 = arith.constant 0 : index
    %c0_9 = arith.constant 0 : index
    %17 = vector.load %arg6[%c0_8, %c0_9] : memref<8x64xf32, #tpu.memory_space<vmem>>, vector<8x64xf32>
    tpu.vector_store %arg6[%c0_8, %c0_9], %16 {strides = array<i32>} : memref<8x64xf32, #tpu.memory_space<vmem>>, vector<8x64xf32>,
    %18 = tpu.transpose %11, [1, 0] : vector<128x128xf32> -> vector<128x128xf32>
    %c0_10 = arith.constant 0 : index
    %c0_11 = arith.constant 0 : index
    %19 = vector.load %arg5[%c0_10, %c0_11] : memref<128x128xf32, #tpu.memory_space<vmem>>, vector<128x128xf32>
    tpu.vector_store %arg5[%c0_10, %c0_11], %18 {strides = array<i32>} : memref<128x128xf32, #tpu.memory_space<vmem>>, vector<128x128xf32>,
    return
  }
  func.func @transform_0(%arg0: i32) -> i32 {
    %c0_i32 = arith.constant 0 : i32
    %c0_i32_0 = arith.constant 0 : i32
    return %c0_i32 : i32
  }
  func.func @transform_1(%arg0: i32) -> (i32, i32) {
    %c0_i32 = arith.constant 0 : i32
    %c0_i32_0 = arith.constant 0 : i32
    return %arg0, %c0_i32 : i32, i32
  }
  func.func @transform_2(%arg0: i32) -> (i32, i32) {
    %c0_i32 = arith.constant 0 : i32
    %c0_i32_0 = arith.constant 0 : i32
    %c0_i32_1 = arith.constant 0 : i32
    return %c0_i32, %c0_i32_0 : i32, i32
  }
  func.func @transform_3(%arg0: i32) -> (i32, i32) {
    %c0_i32 = arith.constant 0 : i32
    %c0_i32_0 = arith.constant 0 : i32
    %c0_i32_1 = arith.constant 0 : i32
    return %c0_i32, %c0_i32_0 : i32, i32
  }
  func.func @transform_4(%arg0: i32) -> (i32, i32) {
    %c0_i32 = arith.constant 0 : i32
    %c0_i32_0 = arith.constant 0 : i32
    return %c0_i32, %arg0 : i32, i32
  }
  func.func @transform_5(%arg0: i32) -> (i32, i32) {
    %c0_i32 = arith.constant 0 : i32
    %c0_i32_0 = arith.constant 0 : i32
    return %arg0, %c0_i32 : i32, i32
  }
}

module attributes {stable_mosaic.version = 11 : i64} {
  func.func @disc_kernel(%arg0: i32, %arg1: memref<1xf32, #tpu.memory_space<smem>>, %arg2: memref<16x64xf32, #tpu.memory_space<vmem>>, %arg3: memref<64x64xf32, #tpu.memory_space<vmem>>, %arg4: memref<128x128xf32, #tpu.memory_space<vmem>>, %arg5: memref<2x128xf32, #tpu.memory_space<vmem>>) attributes {dimension_semantics = [#tpu.dimension_semantics<parallel>], iteration_bounds = array<i64: 2>, scalar_prefetch = 0 : i64, scratch_operands = 0 : i64, tpu.core_type = #tpu.core_type<tc>, window_params = [{transform_indices = @transform_0, window_bounds = array<i64: 1>}, {pipeline_mode = #tpu.pipeline_mode<synchronous>, transform_indices = @transform_1, window_bounds = array<i64: 16, 64>}, {pipeline_mode = #tpu.pipeline_mode<synchronous>, transform_indices = @transform_2, window_bounds = array<i64: 64, 64>}, {transform_indices = @transform_3, window_bounds = array<i64: 128, 128>}, {transform_indices = @transform_4, window_bounds = array<i64: 2, 128>}]} {
    %c0 = arith.constant 0 : index
    %c0_0 = arith.constant 0 : index
    %0 = vector.load %arg2[%c0, %c0_0] : memref<16x64xf32, #tpu.memory_space<vmem>>, vector<16x64xf32>
    %cst = arith.constant dense<0.000000e+00> : vector<64xf32>
    %1 = vector.multi_reduction <add>, %0, %cst [0] : vector<16x64xf32> to vector<64xf32>
    %2 = vector.shape_cast %1 : vector<64xf32> to vector<1x64xf32>
    %cst_1 = arith.constant 4.8828125E-4 : f32
    %3 = vector.broadcast %cst_1 : f32 to vector<1x64xf32>
    %4 = arith.mulf %2, %3 : vector<1x64xf32>
    %5 = arith.negf %4 : vector<1x64xf32>
    %6 = math.exp %5 : vector<1x64xf32>
    %cst_2 = arith.constant 1.000000e+00 : f32
    %7 = vector.broadcast %cst_2 : f32 to vector<1x64xf32>
    %8 = arith.addf %7, %6 : vector<1x64xf32>
    %9 = arith.divf %7, %8 : vector<1x64xf32>
    %c0_3 = arith.constant 0 : index
    %c0_4 = arith.constant 0 : index
    %10 = vector.load %arg3[%c0_3, %c0_4] : memref<64x64xf32, #tpu.memory_space<vmem>>, vector<64x64xf32>
    %cst_5 = arith.constant dense<0.000000e+00> : vector<1x64xf32>
    %11 = tpu.matmul %9, %10, %cst_5 {dimension_numbers = #tpu.dot_dimension_numbers<[1], [0], [0], [1], [0, 0, 1, 1], [], []>} : vector<1x64xf32>, vector<64x64xf32>, vector<1x64xf32> -> vector<1x64xf32>
    %c0_6 = arith.constant 0 : index
    %c0_7 = arith.constant 0 : index
    %12 = vector.load %arg4[%c0_6, %c0_7] : memref<128x128xf32, #tpu.memory_space<vmem>>, vector<128x128xf32>
    %13 = vector.extract_strided_slice %12 {offsets = [0, 0], sizes = [64, 128], strides = [1, 1]} : vector<128x128xf32> to vector<64x128xf32>
    %cst_8 = arith.constant dense<0.000000e+00> : vector<1x128xf32>
    %14 = tpu.matmul %11, %13, %cst_8 {dimension_numbers = #tpu.dot_dimension_numbers<[1], [0], [0], [1], [0, 0, 1, 1], [], []>} : vector<1x64xf32>, vector<64x128xf32>, vector<1x128xf32> -> vector<1x128xf32>
    %15 = vector.extract_strided_slice %12 {offsets = [64, 0], sizes = [64, 128], strides = [1, 1]} : vector<128x128xf32> to vector<64x128xf32>
    %cst_9 = arith.constant dense<0.000000e+00> : vector<1x128xf32>
    %16 = tpu.matmul %11, %15, %cst_9 {dimension_numbers = #tpu.dot_dimension_numbers<[1], [0], [0], [1], [0, 0, 1, 1], [], []>} : vector<1x64xf32>, vector<64x128xf32>, vector<1x128xf32> -> vector<1x128xf32>
    %17 = tpu.concatenate %14, %16 in 0 : vector<1x128xf32>, vector<1x128xf32> -> vector<2x128xf32>
    %c0_10 = arith.constant 0 : index
    %18 = memref.load %arg1[%c0_10] : memref<1xf32, #tpu.memory_space<smem>>
    %19 = vector.broadcast %18 : f32 to vector<2x128xf32>
    %20 = arith.addf %17, %19 : vector<2x128xf32>
    %c0_11 = arith.constant 0 : index
    %c0_12 = arith.constant 0 : index
    %21 = vector.load %arg5[%c0_11, %c0_12] : memref<2x128xf32, #tpu.memory_space<vmem>>, vector<2x128xf32>
    tpu.vector_store %arg5[%c0_11, %c0_12], %20 {strides = array<i32>} : memref<2x128xf32, #tpu.memory_space<vmem>>, vector<2x128xf32>,
    return
  }
  func.func @transform_0(%arg0: i32) -> i32 {
    %c0_i32 = arith.constant 0 : i32
    %c0_i32_0 = arith.constant 0 : i32
    return %c0_i32 : i32
  }
  func.func @transform_1(%arg0: i32) -> (i32, i32) {
    %c0_i32 = arith.constant 0 : i32
    %c0_i32_0 = arith.constant 0 : i32
    %c0_i32_1 = arith.constant 0 : i32
    return %c0_i32, %c0_i32_0 : i32, i32
  }
  func.func @transform_2(%arg0: i32) -> (i32, i32) {
    %c0_i32 = arith.constant 0 : i32
    %c0_i32_0 = arith.constant 0 : i32
    %c0_i32_1 = arith.constant 0 : i32
    return %c0_i32, %c0_i32_0 : i32, i32
  }
  func.func @transform_3(%arg0: i32) -> (i32, i32) {
    %c0_i32 = arith.constant 0 : i32
    %c0_i32_0 = arith.constant 0 : i32
    return %c0_i32, %arg0 : i32, i32
  }
  func.func @transform_4(%arg0: i32) -> (i32, i32) {
    %c0_i32 = arith.constant 0 : i32
    %c0_i32_0 = arith.constant 0 : i32
    return %c0_i32, %arg0 : i32, i32
  }
}

</mosaic_0001>

<bundles_post_ra>
// kernel: dgi_forward.4
= control target key start
LH: loop header
LB: loop body
LE: loop exit
PB: predicated region body
PF: predicated region fallthrough
CT: control target
= control target key end

     0   :  { %s1158_s0 = inlined_call_operand.<no memory space> [shape: f32[1], index: 0, kind: input, shape index: {}]   ;;  %s1159_s1 = inlined_call_operand.vmem [shape: f32[256,256], index: 1, kind: input, shape index: {}]   ;;  %s1160_s2 = inlined_call_operand.vmem [shape: f32[256,128], index: 2, kind: input, shape index: {}]   ;;  %s1161_s3 = inlined_call_operand.vmem [shape: f32[1,128], index: 3, kind: input, shape index: {}]   ;;  %s1162_s4 = inlined_call_operand.vmem [shape: f32[128,256], index: 4, kind: output, shape index: {0}]   ;;  %s1163_s5 = inlined_call_operand.vmem [shape: f32[16,64], index: 5, kind: output, shape index: {1}]  }
   0x1   :  { %11 = sst [smem:[#allocation2]] %s1158_s0 }
   0x2   :  { %s883_s20 = smov 0   ;;  %s885_s21 = smov 0  }
   0x3   :  { %s887_s22 = smov 0  }
   0x4 LB: > { %s896_s0 = sadd.s32 4294967295, %s848_s22   ;;  %s898_s23 = sadd.s32 1, %s848_s22   ;;  %s848_s22 = sphi %s887_s22, %s1167_s22   ;;  %s844_s21 = sphi %s885_s21, %s1166_s21   ;;  %s840_s20 = sphi %s883_s20, %s1165_s20  }
   0x5   : > { %s110_s24 = ssub.s32 %s848_s22, %s898_s23  ;;  %s113_s25 = sadd.s32 1, %s844_s21 }
   0x6   : > { %p111_p0 = scmp.eq.s32.totalorder %s110_s24, 0  ;;  %p123_p1 = scmp.ne.s32.totalorder %s844_s21, %s840_s20 }
   0x7   : > { %p124_p2 = scmp.eq.s32.totalorder %s896_s0, 1  ;;  %p758_p3 = scmp.ge.s32.totalorder %s848_s22, 1 }
   0x8   : > { %s906_s26 = scalar_select %p111_p0, %s844_s21, %s113_s25  }
   0x9   : > { %p908_p4 = por %p124_p2, %p123_p1  ;;  %p193_p5 = scmp.lt.s32.totalorder %s848_s22, 3 }
   0xb   : > { %p194_p6 = pnand %p758_p3, %p193_p5 }
   0xc   : > { %s760_s15 = sshll.u32 (!%p194_p6), %s896_s0, 4  ;;  %s434_s12 = sld [smem:[#allocation2]] (!%p194_p6) }
   0xd   : > { %197 = sbr.rel (%p194_p6) target bundleno = 477 (0x1dd), region = 36  ;;  %p226_p7 = scmp.lt.s32.totalorder (!%p194_p6), %s760_s15, 31 }
   0xe   : > { %p232_p8 = scmp.lt.s32.totalorder (!%p194_p6), %s896_s0, 1  ;;  %s216_s24 = sand.u32 (!%p194_p6), 1, %s840_s20  }
   0xf   : > { %s759_s25 = sshll.u32 (!%p194_p6), %s216_s24, 7 }
  0x10   : > { %s1108_s28 = scalar_lea.vmem (!%p194_p6), [#allocation3], %s759_s25 }
  0x12   : > { %v283_v0 = vld [vmem:[%s1160_s2 + $0x78] sm:$0xff]  ;;  %v282_v1 = vld [vmem:[%s1160_s2 + $0x70] sm:$0xff]  ;;  %v281_v4 = vld [vmem:[%s1160_s2 + $0x68] sm:$0xff]  ;;  %s1169_s15 = smov (!%p226_p7, %s760_s15), 31  ;;  %vm484_vm6 = vcmask 523264   ;;  %s765_s20 = sshll.u32 (%p908_p4), %s896_s0, 3 }
  0x13   : > { %v299_v2 = vld [vmem:[%s1160_s2 + $0xf8] sm:$0xff]  ;;  %304 = vmatpush.msra.mxu0 %v283_v0  ;;  %v298_v3 = vld [vmem:[%s1160_s2 + $0xf0] sm:$0xff]  ;;  %v297_v5 = vld [vmem:[%s1160_s2 + $0xe8] sm:$0xff]  ;;  %769 = vmatpush.msra.mxu2 %v283_v0  ;;  %s768_s17 = sshll.u32 %s1169_s15, 4  ;;  %s583_s15 = scalar_lea.vmem (%p908_p4), %s1162_s4, %s765_s20 }
  0x14   : > { %369 = vmatpush.msra.mxu1 %v299_v2  ;;  %785 = vmatpush.msra.mxu3 %v299_v2  ;;  %v280_v6 = vld [vmem:[%s1160_s2 + $0x60] sm:$0xff]  ;;  %v279_v8 = vld [vmem:[%s1160_s2 + $0x58] sm:$0xff]  ;;  %v278_v10 = vld [vmem:[%s1160_s2 + $0x50] sm:$0xff]  ;;  %s1006_s7 = scalar_lea.vmem %s1159_s1, %s768_s17 }
  0x15   : > { %305 = vmatpush.msra.mxu0 %v282_v1  ;;  %v296_v7 = vld [vmem:[%s1160_s2 + $0xe0] sm:$0xff]  ;;  %770 = vmatpush.msra.mxu2 %v282_v1  ;;  %v295_v9 = vld [vmem:[%s1160_s2 + $0xd8] sm:$0xff]  ;;  %v294_v11 = vld [vmem:[%s1160_s2 + $0xd0] sm:$0xff]  ;;  %s233_s16 = scalar_select %p232_p8, %s896_s0, 1 }
  0x16   : > { %370 = vmatpush.msra.mxu1 %v298_v3  ;;  %786 = vmatpush.msra.mxu3 %v298_v3  ;;  %v277_v12 = vld [vmem:[%s1160_s2 + $0x48] sm:$0xff]  ;;  %v276_v14 = vld [vmem:[%s1160_s2 + $0x40] sm:$0xff]  ;;  %v275_v16 = vld [vmem:[%s1160_s2 + $0x38] sm:$0xff] }
  0x17   : > { %306 = vmatpush.msra.mxu0 %v281_v4  ;;  %771 = vmatpush.msra.mxu2 %v281_v4  ;;  %v293_v13 = vld [vmem:[%s1160_s2 + $0xc8] sm:$0xff]  ;;  %v292_v15 = vld [vmem:[%s1160_s2 + $0xc0] sm:$0xff]  ;;  %v291_v17 = vld [vmem:[%s1160_s2 + $0xb8] sm:$0xff]  ;;  %v1052_v4 = vstv %s434_s12  ;;  %s763_s17 = sshll.u32 %s233_s16, 3 }
  0x18   : > { %371 = vmatpush.msra.mxu1 %v297_v5  ;;  %787 = vmatpush.msra.mxu3 %v297_v5  ;;  %v274_v18 = vld [vmem:[%s1160_s2 + $0x30] sm:$0xff]  ;;  %v273_v20 = vld [vmem:[%s1160_s2 + $0x28] sm:$0xff]  ;;  %v272_v22 = vld [vmem:[%s1160_s2 + $0x20] sm:$0xff]  ;;  %s235_s22 = scalar_lea.vmem %s1163_s5, %s763_s17 }
  0x19   : > { %307 = vmatpush.msra.mxu0 %v280_v6  ;;  %772 = vmatpush.msra.mxu2 %v280_v6  ;;  %v290_v19 = vld [vmem:[%s1160_s2 + $0xb0] sm:$0xff]  ;;  %v289_v21 = vld [vmem:[%s1160_s2 + $0xa8] sm:$0xff]  ;;  %v288_v23 = vld [vmem:[%s1160_s2 + $0xa0] sm:$0xff] }
  0x1a   : > { %372 = vmatpush.msra.mxu1 %v296_v7  ;;  %788 = vmatpush.msra.mxu3 %v296_v7  ;;  %v271_v24 = vld [vmem:[%s1160_s2 + $0x18] sm:$0xff]  ;;  %v270_v26 = vld [vmem:[%s1160_s2 + $0x10] sm:$0xff]  ;;  %v269_v28 = vld [vmem:[%s1160_s2 + $0x8] sm:$0xff] }
  0x1b   : > { %308 = vmatpush.msra.mxu0 %v279_v8  ;;  %773 = vmatpush.msra.mxu2 %v279_v8  ;;  %v287_v25 = vld [vmem:[%s1160_s2 + $0x98] sm:$0xff]  ;;  %v286_v27 = vld [vmem:[%s1160_s2 + $0x90] sm:$0xff]  ;;  %v285_v29 = vld [vmem:[%s1160_s2 + $0x88] sm:$0xff] }
  0x1c   : > { %373 = vmatpush.msra.mxu1 %v295_v9  ;;  %789 = vmatpush.msra.mxu3 %v295_v9  ;;  %v268_v30 = vld [vmem:[%s1160_s2] sm:$0xff]  ;;  %v237_v33 = vld [vmem:[%s1006_s7 + $0x8] sm:$0xff]  ;;  %v238_v36 = vld [vmem:[%s1006_s7 + $0x10] sm:$0xff] }
  0x1d   : > { %309 = vmatpush.msra.mxu0 %v278_v10  ;;  %774 = vmatpush.msra.mxu2 %v278_v10  ;;  %v284_v31 = vld [vmem:[%s1160_s2 + $0x80] sm:$0xff]  ;;  %v253_v35 = vld [vmem:[%s1006_s7 + $0x88] sm:$0xff]  ;;  %v239_v37 = vld [vmem:[%s1006_s7 + $0x18] sm:$0xff] }
  0x1e   : > { %374 = vmatpush.msra.mxu1 %v294_v11  ;;  %790 = vmatpush.msra.mxu3 %v294_v11  ;;  %v236_v32 = vld [vmem:[%s1006_s7] sm:$0xff]  ;;  %v254_v38 = vld [vmem:[%s1006_s7 + $0x90] sm:$0xff]  ;;  %v255_v39 = vld [vmem:[%s1006_s7 + $0x98] sm:$0xff] }
  0x1f   : > { %310 = vmatpush.msra.mxu0 %v277_v12  ;;  %775 = vmatpush.msra.mxu2 %v277_v12  ;;  %v252_v34 = vld [vmem:[%s1006_s7 + $0x80] sm:$0xff]  ;;  %v241_v41 = vld [vmem:[%s1006_s7 + $0x28] sm:$0xff]  ;;  %v242_v44 = vld [vmem:[%s1006_s7 + $0x30] sm:$0xff] }
  0x20   : > { %375 = vmatpush.msra.mxu1 %v293_v13  ;;  %791 = vmatpush.msra.mxu3 %v293_v13  ;;  %v240_v40 = vld [vmem:[%s1006_s7 + $0x20] sm:$0xff]  ;;  %v257_v43 = vld [vmem:[%s1006_s7 + $0xa8] sm:$0xff]  ;;  %v243_v45 = vld [vmem:[%s1006_s7 + $0x38] sm:$0xff] }
  0x21   : > { %311 = vmatpush.msra.mxu0 %v276_v14  ;;  %776 = vmatpush.msra.mxu2 %v276_v14  ;;  %v256_v42 = vld [vmem:[%s1006_s7 + $0xa0] sm:$0xff]  ;;  %v258_v46 = vld [vmem:[%s1006_s7 + $0xb0] sm:$0xff]  ;;  %v259_v47 = vld [vmem:[%s1006_s7 + $0xb8] sm:$0xff] }
  0x22   : > { %376 = vmatpush.msra.mxu1 %v292_v15  ;;  %792 = vmatpush.msra.mxu3 %v292_v15  ;;  %v244_v48 = vld [vmem:[%s1006_s7 + $0x40] sm:$0xff]  ;;  %v245_v49 = vld [vmem:[%s1006_s7 + $0x48] sm:$0xff]  ;;  %v246_v52 = vld [vmem:[%s1006_s7 + $0x50] sm:$0xff] }
  0x23   : > { %312 = vmatpush.msra.mxu0 %v275_v16  ;;  %777 = vmatpush.msra.mxu2 %v275_v16  ;;  %v260_v50 = vld [vmem:[%s1006_s7 + $0xc0] sm:$0xff]  ;;  %v261_v51 = vld [vmem:[%s1006_s7 + $0xc8] sm:$0xff]  ;;  %v247_v53 = vld [vmem:[%s1006_s7 + $0x58] sm:$0xff] }
  0x24   : > { %377 = vmatpush.msra.mxu1 %v291_v17  ;;  %793 = vmatpush.msra.mxu3 %v291_v17  ;;  %v262_v54 = vld [vmem:[%s1006_s7 + $0xd0] sm:$0xff]  ;;  %v263_v55 = vld [vmem:[%s1006_s7 + $0xd8] sm:$0xff]  ;;  %v248_v56 = vld [vmem:[%s1006_s7 + $0x60] sm:$0xff] }
  0x25   : > { %313 = vmatpush.msra.mxu0 %v274_v18  ;;  %778 = vmatpush.msra.mxu2 %v274_v18  ;;  %v249_v57 = vld [vmem:[%s1006_s7 + $0x68] sm:$0xff]  ;;  %v264_v58 = vld [vmem:[%s1006_s7 + $0xe0] sm:$0xff]  ;;  %v250_v60 = vld [vmem:[%s1006_s7 + $0x70] sm:$0xff] }
  0x26   : > { %378 = vmatpush.msra.mxu1 %v290_v19  ;;  %794 = vmatpush.msra.mxu3 %v290_v19  ;;  %v265_v59 = vld [vmem:[%s1006_s7 + $0xe8] sm:$0xff]  ;;  %v251_v61 = vld [vmem:[%s1006_s7 + $0x78] sm:$0xff]  ;;  %v266_v62 = vld [vmem:[%s1006_s7 + $0xf0] sm:$0xff] }
  0x27   : > { %314 = vmatpush.msra.mxu0 %v273_v20  ;;  %779 = vmatpush.msra.mxu2 %v273_v20  ;;  %v267_v63 = vld [vmem:[%s1006_s7 + $0xf8] sm:$0xff]  ;;  %v1049_v0 = vld [vmem:[%s1161_s3] ss:$0 sm:$0xff] }
  0x28   : > { %379 = vmatpush.msra.mxu1 %v289_v21  ;;  %795 = vmatpush.msra.mxu3 %v289_v21 }
  0x29   : > { %315 = vmatpush.msra.mxu0 %v272_v22  ;;  %780 = vmatpush.msra.mxu2 %v272_v22 }
  0x2a   : > { %380 = vmatpush.msra.mxu1 %v288_v23  ;;  %796 = vmatpush.msra.mxu3 %v288_v23 }
  0x2b   : > { %316 = vmatpush.msra.mxu0 %v271_v24  ;;  %781 = vmatpush.msra.mxu2 %v271_v24 }
  0x2c   : > { %381 = vmatpush.msra.mxu1 %v287_v25  ;;  %797 = vmatpush.msra.mxu3 %v287_v25 }
  0x2d   : > { %317 = vmatpush.msra.mxu0 %v270_v26  ;;  %782 = vmatpush.msra.mxu2 %v270_v26 }
  0x2e   : > { %382 = vmatpush.msra.mxu1 %v286_v27  ;;  %798 = vmatpush.msra.mxu3 %v286_v27 }
  0x2f   : > { %318 = vmatpush.msra.mxu0 %v269_v28  ;;  %783 = vmatpush.msra.mxu2 %v269_v28 }
  0x30   : > { %383 = vmatpush.msra.mxu1 %v285_v29  ;;  %799 = vmatpush.msra.mxu3 %v285_v29 }
  0x31   : > { %319 = vmatpush.msra.mxu0 %v268_v30  ;;  %784 = vmatpush.msra.mxu2 %v268_v30 }
  0x32   : > { %384 = vmatpush.msra.mxu1 %v284_v31  ;;  %320 = vmatmul.f32.vlgmr.msra.gmra.mxu0 %v236_v32 }
  0x33   : > { %385 = vmatmul.f32.vlgmr.msra.gmra.mxu1 %v237_v33  ;;  %800 = vmatpush.msra.mxu3 %v284_v31 }
  0x34   : > { %344 = vmatmul.f32.vlgmr.msra.gmra.mxu2 %v252_v34  ;;  %409 = vmatmul.f32.vlgmr.msra.gmra.mxu3 %v253_v35 }
  0x3a   : > { %323 = vmatmul.f32.gmra.mxu0 %v238_v36 }
  0x3b   : > { %388 = vmatmul.f32.gmra.mxu1 %v239_v37 }
  0x3c   : > { %347 = vmatmul.f32.gmra.mxu2 %v254_v38  ;;  %412 = vmatmul.f32.gmra.mxu3 %v255_v39 }
  0x42   : > { %326 = vmatmul.f32.gmra.mxu0 %v240_v40 }
  0x43   : > { %391 = vmatmul.f32.gmra.mxu1 %v241_v41 }
  0x44   : > { %350 = vmatmul.f32.gmra.mxu2 %v256_v42  ;;  %415 = vmatmul.f32.gmra.mxu3 %v257_v43 }
  0x4a   : > { %329 = vmatmul.f32.gmra.mxu0 %v242_v44 }
  0x4b   : > { %394 = vmatmul.f32.gmra.mxu1 %v243_v45 }
  0x4c   : > { %353 = vmatmul.f32.gmra.mxu2 %v258_v46  ;;  %418 = vmatmul.f32.gmra.mxu3 %v259_v47 }
  0x52   : > { %332 = vmatmul.f32.gmra.mxu0 %v244_v48 }
  0x53   : > { %397 = vmatmul.f32.gmra.mxu1 %v245_v49 }
  0x54   : > { %356 = vmatmul.f32.gmra.mxu2 %v260_v50  ;;  %421 = vmatmul.f32.gmra.mxu3 %v261_v51 }
  0x5a   : > { %335 = vmatmul.f32.gmra.mxu0 %v246_v52 }
  0x5b   : > { %400 = vmatmul.f32.gmra.mxu1 %v247_v53 }
  0x5c   : > { %359 = vmatmul.f32.gmra.mxu2 %v262_v54  ;;  %424 = vmatmul.f32.gmra.mxu3 %v263_v55 }
  0x62   : > { %338 = vmatmul.f32.gmra.mxu0 %v248_v56 }
  0x63   : > { %403 = vmatmul.f32.gmra.mxu1 %v249_v57 }
  0x64   : > { %362 = vmatmul.f32.gmra.mxu2 %v264_v58  ;;  %427 = vmatmul.f32.gmra.mxu3 %v265_v59 }
  0x6a   : > { %341 = vmatmul.f32.gmra.mxu0 %v250_v60 }
  0x6b   : > { %406 = vmatmul.f32.gmra.mxu1 %v251_v61 }
  0x6c   : > { %365 = vmatmul.f32.gmra.mxu2 %v266_v62  ;;  %430 = vmatmul.f32.gmra.mxu3 %v267_v63 }
  0xaf   : > { %v321_v1 = vpop.f32.mrf.mxu0 }
  0xb0   : > { %v386_v2 = vpop.f32.mrf.mxu1  ;;  %v322_v3 = vadd.f32 %v1049_v0, %v321_v1 }
  0xb2   : > { %v387_v5 = vadd.f32 %v386_v2, %v322_v3 }
  0xb4   : > { %vm435_vm0 = vcmp.gt.f32.partialorder %v387_v5, 0.0  ;;  %v452_v6 = vmul.f32 %v1052_v4, %v387_v5 }
  0xb6   : > { %v468_v7 = vsel %vm435_vm0, %v387_v5, %v452_v6 }
  0xb7   : > { %v324_v8 = vpop.f32.mrf.mxu0  ;;  %523 = vxpose.xlu0.b32.start [1/16] %v468_v7, 128  ;;  %v345_v11 = vpop.f32.mrf.mxu2  ;;  %v485_v57 = vsel %vm484_vm6, %v468_v7, 0.0 }
  0xb8   : > { %v389_v9 = vpop.f32.mrf.mxu1  ;;  %v325_v10 = vadd.f32 %v1049_v0, %v324_v8  ;;  %v410_v12 = vpop.f32.mrf.mxu3  ;;  %v346_v48 = vadd.f32 %v1049_v0, %v345_v11 }
  0xba   : > { %v390_v13 = vadd.f32 %v389_v9, %v325_v10  ;;  %v411_v58 = vadd.f32 %v410_v12, %v346_v48 }
  0xbc   : > { %vm436_vm1 = vcmp.gt.f32.partialorder %v390_v13, 0.0  ;;  %v453_v14 = vmul.f32 %v1052_v4, %v390_v13  ;;  %v460_v11 = vmul.f32 %v1052_v4, %v411_v58  ;;  %vm443_vm8 = vcmp.gt.f32.partialorder %v411_v58, 0.0 }
  0xbe   : > { %v469_v15 = vsel %vm436_vm1, %v390_v13, %v453_v14 }
  0xbf   : > { %v327_v16 = vpop.f32.mrf.mxu0  ;;  %524 = vxpose.xlu0.b32.cont [2/16] %v469_v15, 128  ;;  %v348_v19 = vpop.f32.mrf.mxu2  ;;  %v486_v54 = vsel %vm484_vm6, %v469_v15, 0.0 }
  0xc0   : > { %v392_v17 = vpop.f32.mrf.mxu1  ;;  %v328_v18 = vadd.f32 %v1049_v0, %v327_v16  ;;  %v413_v20 = vpop.f32.mrf.mxu3  ;;  %v349_v55 = vadd.f32 %v1049_v0, %v348_v19  ;;  %v487_v61 = vadd.f32 %v486_v54, %v485_v57 }
  0xc2   : > { %v393_v21 = vadd.f32 %v392_v17, %v328_v18  ;;  %v414_v63 = vadd.f32 %v413_v20, %v349_v55 }
  0xc4   : > { %vm437_vm2 = vcmp.gt.f32.partialorder %v393_v21, 0.0  ;;  %v454_v22 = vmul.f32 %v1052_v4, %v393_v21  ;;  %vm444_vm9 = vcmp.gt.f32.partialorder %v414_v63, 0.0  ;;  %v461_v17 = vmul.f32 %v1052_v4, %v414_v63 }
  0xc6   : > { %v470_v23 = vsel %vm437_vm2, %v393_v21, %v454_v22 }
  0xc7   : > { %v330_v24 = vpop.f32.mrf.mxu0  ;;  %525 = vxpose.xlu0.b32.cont [3/16] %v470_v23, 128  ;;  %v351_v27 = vpop.f32.mrf.mxu2  ;;  %v488_v59 = vsel %vm484_vm6, %v470_v23, 0.0 }
  0xc8   : > { %v395_v25 = vpop.f32.mrf.mxu1  ;;  %v331_v26 = vadd.f32 %v1049_v0, %v330_v24  ;;  %v416_v28 = vpop.f32.mrf.mxu3  ;;  %v352_v60 = vadd.f32 %v1049_v0, %v351_v27  ;;  %v489_v2 = vadd.f32 %v488_v59, %v487_v61  ;;  %v476_v24 = vsel %vm443_vm8, %v411_v58, %v460_v11 }
  0xca   : > { %v396_v29 = vadd.f32 %v395_v25, %v331_v26  ;;  %v417_v6 = vadd.f32 %v416_v28, %v352_v60 }
  0xcc   : > { %vm438_vm3 = vcmp.gt.f32.partialorder %v396_v29, 0.0  ;;  %v455_v30 = vmul.f32 %v1052_v4, %v396_v29  ;;  %v462_v25 = vmul.f32 %v1052_v4, %v417_v6  ;;  %vm445_vm11 = vcmp.gt.f32.partialorder %v417_v6, 0.0 }
  0xce   : > { %v471_v31 = vsel %vm438_vm3, %v396_v29, %v455_v30  ;;  %v477_v29 = vsel %vm444_vm9, %v414_v63, %v461_v17 }
  0xcf   : > { %v333_v32 = vpop.f32.mrf.mxu0  ;;  %526 = vxpose.xlu0.b32.cont [4/16] %v471_v31, 128  ;;  %v354_v35 = vpop.f32.mrf.mxu2  ;;  %v490_v1 = vsel %vm484_vm6, %v471_v31, 0.0 }
  0xd0   : > { %v398_v33 = vpop.f32.mrf.mxu1  ;;  %v334_v34 = vadd.f32 %v1049_v0, %v333_v32  ;;  %v419_v36 = vpop.f32.mrf.mxu3  ;;  %v355_v3 = vadd.f32 %v1049_v0, %v354_v35  ;;  %v491_v12 = vadd.f32 %v490_v1, %v489_v2  ;;  %v500_v35 = vsel %vm484_vm6, %v476_v24, 0.0 }
  0xd2   : > { %v399_v37 = vadd.f32 %v398_v33, %v334_v34  ;;  %v420_v19 = vadd.f32 %v419_v36, %v355_v3 }
  0xd4   : > { %vm439_vm4 = vcmp.gt.f32.partialorder %v399_v37, 0.0  ;;  %v456_v38 = vmul.f32 %v1052_v4, %v399_v37  ;;  %v463_v33 = vmul.f32 %v1052_v4, %v420_v19  ;;  %vm446_vm12 = vcmp.gt.f32.partialorder %v420_v19, 0.0 }
  0xd6   : > { %v472_v39 = vsel %vm439_vm4, %v399_v37, %v456_v38 }
  0xd7   : > { %v336_v40 = vpop.f32.mrf.mxu0  ;;  %527 = vxpose.xlu0.b32.cont [5/16] %v472_v39, 128  ;;  %v357_v43 = vpop.f32.mrf.mxu2  ;;  %v492_v8 = vsel %vm484_vm6, %v472_v39, 0.0 }
  0xd8   : > { %v401_v41 = vpop.f32.mrf.mxu1  ;;  %v337_v42 = vadd.f32 %v1049_v0, %v336_v40  ;;  %v422_v44 = vpop.f32.mrf.mxu3  ;;  %v358_v7 = vadd.f32 %v1049_v0, %v357_v43  ;;  %v493_v18 = vadd.f32 %v492_v8, %v491_v12  ;;  %v478_v40 = vsel %vm445_vm11, %v417_v6, %v462_v25 }
  0xd9   : > { %v502_v43 = vsel %vm484_vm6, %v477_v29, 0.0  ;;  %v504_v48 = vsel %vm484_vm6, %v478_v40, 0.0 }
  0xda   : > { %v402_v45 = vadd.f32 %v401_v41, %v337_v42  ;;  %v423_v22 = vadd.f32 %v422_v44, %v358_v7 }
  0xdc   : > { %vm440_vm5 = vcmp.gt.f32.partialorder %v402_v45, 0.0  ;;  %v457_v46 = vmul.f32 %v1052_v4, %v402_v45  ;;  %v464_v41 = vmul.f32 %v1052_v4, %v423_v22  ;;  %vm447_vm13 = vcmp.gt.f32.partialorder %v423_v22, 0.0 }
  0xde   : > { %v473_v47 = vsel %vm440_vm5, %v402_v45, %v457_v46  ;;  %v479_v45 = vsel %vm446_vm12, %v420_v19, %v463_v33 }
  0xdf   : > { %v339_v49 = vpop.f32.mrf.mxu0  ;;  %528 = vxpose.xlu0.b32.cont [6/16] %v473_v47, 128  ;;  %v360_v52 = vpop.f32.mrf.mxu2  ;;  %v494_v16 = vsel %vm484_vm6, %v473_v47, 0.0 }
  0xe0   : > { %v404_v50 = vpop.f32.mrf.mxu1  ;;  %v340_v51 = vadd.f32 %v1049_v0, %v339_v49  ;;  %v425_v53 = vpop.f32.mrf.mxu3  ;;  %v361_v20 = vadd.f32 %v1049_v0, %v360_v52  ;;  %v495_v26 = vadd.f32 %v494_v16, %v493_v18  ;;  %v506_v52 = vsel %vm484_vm6, %v479_v45, 0.0 }
  0xe2   : > { %v405_v56 = vadd.f32 %v404_v50, %v340_v51  ;;  %v426_v31 = vadd.f32 %v425_v53, %v361_v20  ;;  %v480_v50 = vsel %vm447_vm13, %v423_v22, %v464_v41 }
  0xe3   : > { %v508_v55 = vsel %vm484_vm6, %v480_v50, 0.0 }
  0xe4   : > { %vm441_vm7 = vcmp.gt.f32.partialorder %v405_v56, 0.0  ;;  %v458_v62 = vmul.f32 %v1052_v4, %v405_v56  ;;  %v465_v46 = vmul.f32 %v1052_v4, %v426_v31  ;;  %vm448_vm14 = vcmp.gt.f32.partialorder %v426_v31, 0.0 }
  0xe6   : > { %v474_v5 = vsel %vm441_vm7, %v405_v56, %v458_v62 }
  0xe7   : > { %v342_v9 = vpop.f32.mrf.mxu0  ;;  %529 = vxpose.xlu0.b32.cont [7/16] %v474_v5, 128  ;;  %v363_v14 = vpop.f32.mrf.mxu2  ;;  %v496_v23 = vsel %vm484_vm6, %v474_v5, 0.0 }
  0xe8   : > { %v407_v10 = vpop.f32.mrf.mxu1  ;;  %v343_v13 = vadd.f32 %v1049_v0, %v342_v9  ;;  %v428_v15 = vpop.f32.mrf.mxu3  ;;  %v364_v27 = vadd.f32 %v1049_v0, %v363_v14  ;;  %v497_v30 = vadd.f32 %v496_v23, %v495_v26 }
  0xea   : > { %v408_v21 = vadd.f32 %v407_v10, %v343_v13  ;;  %v429_v37 = vadd.f32 %v428_v15, %v364_v27 }
  0xec   : > { %vm442_vm10 = vcmp.gt.f32.partialorder %v408_v21, 0.0  ;;  %v459_v28 = vmul.f32 %v1052_v4, %v408_v21  ;;  %v466_v51 = vmul.f32 %v1052_v4, %v429_v37  ;;  %vm449_vm15 = vcmp.gt.f32.partialorder %v429_v37, 0.0 }
  0xee   : > { %v475_v32 = vsel %vm442_vm10, %v408_v21, %v459_v28  ;;  %v482_v57 = vsel %vm449_vm15, %v429_v37, %v466_v51 }
  0xef   : > { %v498_v34 = vsel %vm484_vm6, %v475_v32, 0.0  ;;  %530 = vxpose.xlu0.b32.cont [8/16] %v475_v32, 128  ;;  %v366_v38 = vpop.f32.mrf.mxu2  ;;  %v512_v61 = vsel %vm484_vm6, %v482_v57, 0.0 }
  0xf0   : > { %v499_v36 = vadd.f32 %v498_v34, %v497_v30  ;;  %v431_v39 = vpop.f32.mrf.mxu3  ;;  %v367_v42 = vadd.f32 %v1049_v0, %v366_v38  ;;  %v481_v0 = vsel %vm448_vm14, %v426_v31, %v465_v46 }
  0xf1   : > { %v510_v58 = vsel %vm484_vm6, %v481_v0, 0.0 }
  0xf2   : > { %v501_v44 = vadd.f32 %v500_v35, %v499_v36  ;;  %v432_v47 = vadd.f32 %v431_v39, %v367_v42 }
  0xf4   : > { %v503_v49 = vadd.f32 %v502_v43, %v501_v44  ;;  %v467_v54 = vmul.f32 %v1052_v4, %v432_v47  ;;  %vm450_vm0 = vcmp.gt.f32.partialorder %v432_v47, 0.0 }
  0xf6   : > { %v505_v53 = vadd.f32 %v504_v48, %v503_v49  ;;  %v483_v60 = vsel %vm450_vm0, %v432_v47, %v467_v54 }
  0xf7   : > { %531 = vxpose.xlu0.b32.cont [9/16] %v476_v24, 128  ;;  %v514_v63 = vsel %vm484_vm6, %v483_v60, 0.0 }
  0xf8   : > { %v507_v56 = vadd.f32 %v506_v52, %v505_v53 }
  0xfa   : > { %v509_v59 = vadd.f32 %v508_v55, %v507_v56 }
  0xfc   : > { %v511_v62 = vadd.f32 %v510_v58, %v509_v59 }
  0xfe   : > { %v513_v1 = vadd.f32 %v512_v61, %v511_v62 }
  0xff   : > { %532 = vxpose.xlu0.b32.cont [10/16] %v477_v29, 128 }
 0x100   : > { %v515_v4 = vadd.f32 %v514_v63, %v513_v1 }
 0x102   : > { %v516_v2 = vrot.slane %v515_v4, 4 }
 0x104   : > { %v517_v3 = vadd.f32 %v516_v2, %v515_v4 }
 0x106   : > { %v518_v5 = vrot.slane %v517_v3, 2 }
 0x107   : > { %533 = vxpose.xlu0.b32.cont [11/16] %v478_v40, 128 }
 0x108   : > { %v519_v6 = vadd.f32 %v518_v5, %v517_v3 }
 0x10a   : > { %v520_v8 = vrot.slane %v519_v6, 1 }
 0x10c   : > { %v521_v7 = vadd.f32 %v520_v8, %v519_v6 }
 0x10e   : > { %522 = vst.msk [vmem:[%s235_s22] sm:$0xff] %vm484_vm6, %v521_v7 }
 0x10f   : > { %534 = vxpose.xlu0.b32.cont [12/16] %v479_v45, 128 }
 0x117   : > { %535 = vxpose.xlu0.b32.cont [13/16] %v480_v50, 128 }
 0x11f   : > { %536 = vxpose.xlu0.b32.cont [14/16] %v481_v0, 128 }
 0x127   : > { %537 = vxpose.xlu0.b32.cont [15/16] %v482_v57, 128 }
 0x12f   : > { %538 = vxpose.xlu0.b32.end [16/16] %v483_v60, 128 }
 0x15b   : > { %v539_v9 = vpop.trf.xlu0 }
 0x15c   : > { %555 = vst [vmem:[%s1108_s28] sm:$0xff] %v539_v9 }
 0x163   : > { %v540_v10 = vpop.trf.xlu0  ;;  %v642_v25 = vld [vmem:[%s1108_s28] sm:$0xff] (%p908_p4) }
 0x164   : > { %556 = vst [vmem:[%s1108_s28 + $0x8] sm:$0xff] %v540_v10 }
 0x165   : > { %643 = vst [vmem:[%s583_s15] sm:$0xff] (%p908_p4), %v642_v25 }
 0x16b   : > { %v541_v11 = vpop.trf.xlu0  ;;  %v644_v26 = vld [vmem:[%s1108_s28 + $0x8] sm:$0xff] (%p908_p4) }
 0x16c   : > { %557 = vst [vmem:[%s1108_s28 + $0x10] sm:$0xff] %v541_v11 }
 0x16d   : > { %645 = vst [vmem:[%s583_s15 + $0x10] sm:$0xff] (%p908_p4), %v644_v26 }
 0x173   : > { %v542_v12 = vpop.trf.xlu0  ;;  %v646_v27 = vld [vmem:[%s1108_s28 + $0x10] sm:$0xff] (%p908_p4) }
 0x174   : > { %558 = vst [vmem:[%s1108_s28 + $0x18] sm:$0xff] %v542_v12 }
 0x175   : > { %647 = vst [vmem:[%s583_s15 + $0x20] sm:$0xff] (%p908_p4), %v646_v27 }
 0x17b   : > { %v543_v13 = vpop.trf.xlu0  ;;  %v648_v28 = vld [vmem:[%s1108_s28 + $0x18] sm:$0xff] (%p908_p4) }
 0x17c   : > { %559 = vst [vmem:[%s1108_s28 + $0x20] sm:$0xff] %v543_v13 }
 0x17d   : > { %649 = vst [vmem:[%s583_s15 + $0x30] sm:$0xff] (%p908_p4), %v648_v28 }
 0x183   : > { %v544_v14 = vpop.trf.xlu0  ;;  %v650_v29 = vld [vmem:[%s1108_s28 + $0x20] sm:$0xff] (%p908_p4) }
 0x184   : > { %560 = vst [vmem:[%s1108_s28 + $0x28] sm:$0xff] %v544_v14 }
 0x185   : > { %651 = vst [vmem:[%s583_s15 + $0x40] sm:$0xff] (%p908_p4), %v650_v29 }
 0x18b   : > { %v545_v15 = vpop.trf.xlu0  ;;  %v652_v30 = vld [vmem:[%s1108_s28 + $0x28] sm:$0xff] (%p908_p4) }
 0x18c   : > { %561 = vst [vmem:[%s1108_s28 + $0x30] sm:$0xff] %v545_v15 }
 0x18d   : > { %653 = vst [vmem:[%s583_s15 + $0x50] sm:$0xff] (%p908_p4), %v652_v30 }
 0x193   : > { %v546_v16 = vpop.trf.xlu0  ;;  %v654_v31 = vld [vmem:[%s1108_s28 + $0x30] sm:$0xff] (%p908_p4) }
 0x194   : > { %562 = vst [vmem:[%s1108_s28 + $0x38] sm:$0xff] %v546_v16 }
 0x195   : > { %655 = vst [vmem:[%s583_s15 + $0x60] sm:$0xff] (%p908_p4), %v654_v31 }
 0x19b   : > { %v547_v17 = vpop.trf.xlu0  ;;  %v656_v32 = vld [vmem:[%s1108_s28 + $0x38] sm:$0xff] (%p908_p4) }
 0x19c   : > { %563 = vst [vmem:[%s1108_s28 + $0x40] sm:$0xff] %v547_v17 }
 0x19d   : > { %657 = vst [vmem:[%s583_s15 + $0x70] sm:$0xff] (%p908_p4), %v656_v32 }
 0x1a3   : > { %v548_v18 = vpop.trf.xlu0  ;;  %v658_v33 = vld [vmem:[%s1108_s28 + $0x40] sm:$0xff] (%p908_p4) }
 0x1a4   : > { %564 = vst [vmem:[%s1108_s28 + $0x48] sm:$0xff] %v548_v18 }
 0x1a5   : > { %659 = vst [vmem:[%s583_s15 + $0x80] sm:$0xff] (%p908_p4), %v658_v33 }
 0x1ab   : > { %v549_v19 = vpop.trf.xlu0  ;;  %v660_v34 = vld [vmem:[%s1108_s28 + $0x48] sm:$0xff] (%p908_p4) }
 0x1ac   : > { %565 = vst [vmem:[%s1108_s28 + $0x50] sm:$0xff] %v549_v19 }
 0x1ad   : > { %661 = vst [vmem:[%s583_s15 + $0x90] sm:$0xff] (%p908_p4), %v660_v34 }
 0x1b3   : > { %v550_v20 = vpop.trf.xlu0  ;;  %v662_v35 = vld [vmem:[%s1108_s28 + $0x50] sm:$0xff] (%p908_p4) }
 0x1b4   : > { %566 = vst [vmem:[%s1108_s28 + $0x58] sm:$0xff] %v550_v20 }
 0x1b5   : > { %663 = vst [vmem:[%s583_s15 + $0xa0] sm:$0xff] (%p908_p4), %v662_v35 }
 0x1bb   : > { %v551_v21 = vpop.trf.xlu0  ;;  %v664_v36 = vld [vmem:[%s1108_s28 + $0x58] sm:$0xff] (%p908_p4) }
 0x1bc   : > { %567 = vst [vmem:[%s1108_s28 + $0x60] sm:$0xff] %v551_v21 }
 0x1bd   : > { %665 = vst [vmem:[%s583_s15 + $0xb0] sm:$0xff] (%p908_p4), %v664_v36 }
 0x1c3   : > { %v552_v22 = vpop.trf.xlu0  ;;  %v666_v37 = vld [vmem:[%s1108_s28 + $0x60] sm:$0xff] (%p908_p4) }
 0x1c4   : > { %568 = vst [vmem:[%s1108_s28 + $0x68] sm:$0xff] %v552_v22 }
 0x1c5   : > { %667 = vst [vmem:[%s583_s15 + $0xc0] sm:$0xff] (%p908_p4), %v666_v37 }
 0x1cb   : > { %v553_v23 = vpop.trf.xlu0  ;;  %v668_v38 = vld [vmem:[%s1108_s28 + $0x68] sm:$0xff] (%p908_p4) }
 0x1cc   : > { %569 = vst [vmem:[%s1108_s28 + $0x70] sm:$0xff] %v553_v23 }
 0x1cd   : > { %669 = vst [vmem:[%s583_s15 + $0xd0] sm:$0xff] (%p908_p4), %v668_v38 }
 0x1d0   : > { %581 = sbr.rel (!%p908_p4) target bundleno = 477 (0x1dd), region = 40 }
 0x1d3   : > { %v554_v24 = vpop.trf.xlu0  ;;  %v670_v39 = vld [vmem:[%s1108_s28 + $0x70] sm:$0xff] (%p908_p4) }
 0x1d4   : > { %570 = vst [vmem:[%s1108_s28 + $0x78] sm:$0xff] %v554_v24 }
 0x1d5   : > { %671 = vst [vmem:[%s583_s15 + $0xe0] sm:$0xff] %v670_v39 }
 0x1db   : > { %v672_v40 = vld [vmem:[%s1108_s28 + $0x78] sm:$0xff] }
 0x1dc   : > { %673 = vst [vmem:[%s583_s15 + $0xf0] sm:$0xff] %v672_v40 }
 0x1dd PF: > { %p14_p9 = scmp.ge.s32.totalorder %s898_s23, 4   ;;  %s1165_s20 = smov %s844_s21 }
 0x1de   : > { %s1166_s21 = smov %s906_s26  ;;  %s1167_s22 = smov %s898_s23 }
 0x1df   :  { %16 = sbr.rel (!%p14_p9) target bundleno = 4 (0x4), region = 116 }

// kernel: dgi_forward.3
= control target key start
LH: loop header
LB: loop body
LE: loop exit
PB: predicated region body
PF: predicated region fallthrough
CT: control target
= control target key end

     0   :  { %s715_s12 = smov 0   ;;  %s870_s0 = inlined_call_operand.vmem [shape: f32[256,32], index: 0, kind: input, shape index: {}]   ;;  %s871_s1 = inlined_call_operand.vmem [shape: f32[256,32], index: 1, kind: input, shape index: {}]   ;;  %s872_s2 = inlined_call_operand.vmem [shape: f32[32,64], index: 2, kind: input, shape index: {}]   ;;  %s873_s3 = inlined_call_operand.vmem [shape: f32[256,128], index: 3, kind: output, shape index: {}]  }
   0x1 LB: > { %s624_s13 = sadd.s32 4294967295, %s692_s12   ;;  %p628_p0 = scmp.ge.s32.totalorder %s692_s12, 1  ;;  %s692_s12 = sphi %s715_s12, %s13_s12  }
   0x2   : > { %p149_p1 = scmp.lt.s32.totalorder %s692_s12, 3 }
   0x4   : > { %p150_p2 = pnand %p628_p0, %p149_p1 }
   0x5   : > { %s629_s18 = sshll.u32 (!%p150_p2), %s624_s13, 4  ;;  %s694_s30 = smov (!%p150_p2), 64  }
   0x6   : > { %153 = sbr.rel (%p150_p2) target bundleno = 326 (0x146), region = 32  ;;  %p179_p3 = scmp.lt.s32.totalorder (!%p150_p2), %s629_s18, 31 }
   0xb   : > { %v199_v0 = vld [vmem:[%s872_s2 + $0x18] sm:$0xff]  ;;  %v198_v1 = vld [vmem:[%s872_s2 + $0x10] sm:$0xff]  ;;  %v197_v2 = vld [vmem:[%s872_s2 + $0x8] sm:$0xff]  ;;  %s875_s18 = smov (!%p179_p3, %s629_s18), 31  ;;  %vm216_vm0 = vcmask 261120   ;;  %vm523_vm1 = vcmask 523264  }
   0xc   : > { %406 = vmatpush.msra.mxu1 %v199_v0  ;;  %673 = vmatpush.msra.mxu3 %v199_v0  ;;  %v196_v3 = vld [vmem:[%s872_s2] sm:$0xff]  ;;  %s735_s23 = sshll.u32 %s875_s18, 3 }
   0xd   : > { %669 = vmatpush.msra.mxu2 %v199_v0  ;;  %277 = vmatpush.msra.mxu0 %v199_v0  ;;  %s741_s26 = scalar_lea.vmem %s871_s1, %s735_s23  ;;  %s761_s29 = scalar_lea.vmem %s870_s0, %s735_s23 }
   0xe   : > { %407 = vmatpush.msra.mxu1 %v198_v1  ;;  %674 = vmatpush.msra.mxu3 %v198_v1  ;;  %v330_v4 = vld [vmem:[%s741_s26] sm:$0xff]  ;;  %v331_v6 = vld [vmem:[%s741_s26 + $0x8] sm:$0xff]  ;;  %v332_v8 = vld [vmem:[%s741_s26 + $0x10] sm:$0xff]  ;;  %s833_s6 = scalar_lea.vmem %s873_s3, %s735_s23 }
   0xf   : > { %670 = vmatpush.msra.mxu2 %v198_v1  ;;  %278 = vmatpush.msra.mxu0 %v198_v1  ;;  %v338_v5 = vld [vmem:[%s741_s26 + $0x40] sm:$0xff]  ;;  %v339_v7 = vld [vmem:[%s741_s26 + $0x48] sm:$0xff]  ;;  %v340_v9 = vld [vmem:[%s741_s26 + $0x50] sm:$0xff] }
  0x10   : > { %408 = vmatpush.msra.mxu1 %v197_v2  ;;  %675 = vmatpush.msra.mxu3 %v197_v2  ;;  %v333_v10 = vld [vmem:[%s741_s26 + $0x18] sm:$0xff]  ;;  %v208_v12 = vld [vmem:[%s761_s29 + $0x40] sm:$0xff]  ;;  %v209_v16 = vld [vmem:[%s761_s29 + $0x48] sm:$0xff] }
  0x11   : > { %671 = vmatpush.msra.mxu2 %v197_v2  ;;  %279 = vmatpush.msra.mxu0 %v197_v2  ;;  %v341_v11 = vld [vmem:[%s741_s26 + $0x58] sm:$0xff]  ;;  %v200_v13 = vld [vmem:[%s761_s29] sm:$0xff]  ;;  %v201_v17 = vld [vmem:[%s761_s29 + $0x8] sm:$0xff] }
  0x12   : > { %409 = vmatpush.msra.mxu1 %v196_v3  ;;  %676 = vmatpush.msra.mxu3 %v196_v3  ;;  %v334_v14 = vld [vmem:[%s741_s26 + $0x20] sm:$0xff]  ;;  %v335_v18 = vld [vmem:[%s741_s26 + $0x28] sm:$0xff]  ;;  %v210_v20 = vld [vmem:[%s761_s29 + $0x50] sm:$0xff] }
  0x13   : > { %651 = vmatmul.msk.f32.vlgmr.msra.gmra.mxu1 %vm216_vm0, %v330_v4  ;;  %659 = vmatmul.msk.f32.vlgmr.msra.gmra.mxu3 %vm216_vm0, %v338_v5  ;;  %v342_v15 = vld [vmem:[%s741_s26 + $0x60] sm:$0xff]  ;;  %v343_v19 = vld [vmem:[%s741_s26 + $0x68] sm:$0xff]  ;;  %v202_v21 = vld [vmem:[%s761_s29 + $0x10] sm:$0xff] }
  0x14   : > { %672 = vmatpush.msra.mxu2 %v196_v3  ;;  %280 = vmatpush.msra.mxu0 %v196_v3  ;;  %v336_v22 = vld [vmem:[%s741_s26 + $0x30] sm:$0xff]  ;;  %v211_v24 = vld [vmem:[%s761_s29 + $0x58] sm:$0xff]  ;;  %v212_v28 = vld [vmem:[%s761_s29 + $0x60] sm:$0xff] }
  0x15   : > { %643 = vmatmul.msk.f32.vlgmr.msra.gmra.mxu2 %vm216_vm0, %v208_v12  ;;  %635 = vmatmul.msk.f32.vlgmr.msra.gmra.mxu0 %vm216_vm0, %v200_v13  ;;  %v344_v23 = vld [vmem:[%s741_s26 + $0x70] sm:$0xff]  ;;  %v203_v25 = vld [vmem:[%s761_s29 + $0x18] sm:$0xff]  ;;  %v204_v29 = vld [vmem:[%s761_s29 + $0x20] sm:$0xff] }
  0x16   : > { %v337_v26 = vld [vmem:[%s741_s26 + $0x38] sm:$0xff]  ;;  %v213_v30 = vld [vmem:[%s761_s29 + $0x68] sm:$0xff]  ;;  %v214_v32 = vld [vmem:[%s761_s29 + $0x70] sm:$0xff] }
  0x17   : > { %v345_v27 = vld [vmem:[%s741_s26 + $0x78] sm:$0xff]  ;;  %v205_v31 = vld [vmem:[%s761_s29 + $0x28] sm:$0xff]  ;;  %v206_v34 = vld [vmem:[%s761_s29 + $0x30] sm:$0xff] }
  0x18   : > { %v207_v37 = vld [vmem:[%s761_s29 + $0x38] sm:$0xff] }
  0x19   : > { %v215_v39 = vld [vmem:[%s761_s29 + $0x78] sm:$0xff] }
  0x1b   : > { %652 = vmatmul.msk.f32.gmra.mxu1 %vm216_vm0, %v331_v6  ;;  %660 = vmatmul.msk.f32.gmra.mxu3 %vm216_vm0, %v339_v7 }
  0x1d   : > { %644 = vmatmul.msk.f32.gmra.mxu2 %vm216_vm0, %v209_v16  ;;  %636 = vmatmul.msk.f32.gmra.mxu0 %vm216_vm0, %v201_v17 }
  0x23   : > { %653 = vmatmul.msk.f32.gmra.mxu1 %vm216_vm0, %v332_v8  ;;  %661 = vmatmul.msk.f32.gmra.mxu3 %vm216_vm0, %v340_v9 }
  0x25   : > { %645 = vmatmul.msk.f32.gmra.mxu2 %vm216_vm0, %v210_v20  ;;  %637 = vmatmul.msk.f32.gmra.mxu0 %vm216_vm0, %v202_v21 }
  0x2b   : > { %654 = vmatmul.msk.f32.gmra.mxu1 %vm216_vm0, %v333_v10  ;;  %662 = vmatmul.msk.f32.gmra.mxu3 %vm216_vm0, %v341_v11 }
  0x2d   : > { %646 = vmatmul.msk.f32.gmra.mxu2 %vm216_vm0, %v211_v24  ;;  %638 = vmatmul.msk.f32.gmra.mxu0 %vm216_vm0, %v203_v25 }
  0x33   : > { %655 = vmatmul.msk.f32.gmra.mxu1 %vm216_vm0, %v334_v14  ;;  %663 = vmatmul.msk.f32.gmra.mxu3 %vm216_vm0, %v342_v15 }
  0x35   : > { %647 = vmatmul.msk.f32.gmra.mxu2 %vm216_vm0, %v212_v28  ;;  %639 = vmatmul.msk.f32.gmra.mxu0 %vm216_vm0, %v204_v29 }
  0x3b   : > { %656 = vmatmul.msk.f32.gmra.mxu1 %vm216_vm0, %v335_v18  ;;  %664 = vmatmul.msk.f32.gmra.mxu3 %vm216_vm0, %v343_v19 }
  0x3d   : > { %648 = vmatmul.msk.f32.gmra.mxu2 %vm216_vm0, %v213_v30  ;;  %640 = vmatmul.msk.f32.gmra.mxu0 %vm216_vm0, %v205_v31 }
  0x43   : > { %657 = vmatmul.msk.f32.gmra.mxu1 %vm216_vm0, %v336_v22  ;;  %665 = vmatmul.msk.f32.gmra.mxu3 %vm216_vm0, %v344_v23 }
  0x45   : > { %649 = vmatmul.msk.f32.gmra.mxu2 %vm216_vm0, %v214_v32  ;;  %641 = vmatmul.msk.f32.gmra.mxu0 %vm216_vm0, %v206_v34 }
  0x4b   : > { %658 = vmatmul.msk.f32.gmra.mxu1 %vm216_vm0, %v337_v26  ;;  %666 = vmatmul.msk.f32.gmra.mxu3 %vm216_vm0, %v345_v27 }
  0x4d   : > { %642 = vmatmul.msk.f32.gmra.mxu0 %vm216_vm0, %v207_v37  ;;  %650 = vmatmul.msk.f32.gmra.mxu2 %vm216_vm0, %v215_v39 }
  0x90   : > { %v411_v33 = vpop.f32.mrf.mxu1 }
  0x91   : > { %475 = vrot.lane.b32.xlu0 %v411_v33, %s694_s30 }
  0x92   : > { %v282_v53 = vpop.f32.mrf.mxu0 }
  0x96   : > { %v435_v35 = vpop.f32.mrf.mxu3 }
  0x97   : > { %491 = vrot.lane.b32.xlu2 %v435_v35, %s694_s30 }
  0x98   : > { %v414_v36 = vpop.f32.mrf.mxu1  ;;  %v306_v52 = vpop.f32.mrf.mxu2 }
  0x99   : > { %477 = vrot.lane.b32.xlu0 %v414_v36, %s694_s30 }
  0x9a   : > { %v285_v55 = vpop.f32.mrf.mxu0 }
  0x9e   : > { %v438_v38 = vpop.f32.mrf.mxu3 }
  0xa0   : > { %v417_v40 = vpop.f32.mrf.mxu1  ;;  %v309_v54 = vpop.f32.mrf.mxu2 }
  0xa1   : > { %493 = vrot.lane.b32.xlu0 %v438_v38, %s694_s30  ;;  %479 = vrot.lane.b32.xlu1 %v417_v40, %s694_s30 }
  0xa2   : > { %v288_v59 = vpop.f32.mrf.mxu0 }
  0xa6   : > { %v441_v41 = vpop.f32.mrf.mxu3 }
  0xa8   : > { %v420_v42 = vpop.f32.mrf.mxu1  ;;  %v312_v58 = vpop.f32.mrf.mxu2 }
  0xa9   : > { %495 = vrot.lane.b32.xlu1 %v441_v41, %s694_s30 }
  0xaa   : > { %v291_v62 = vpop.f32.mrf.mxu0 }
  0xae   : > { %v444_v43 = vpop.f32.mrf.mxu3 }
  0xaf   : > { %497 = vrot.lane.b32.xlu2 %v444_v43, %s694_s30 }
  0xb0   : > { %v423_v44 = vpop.f32.mrf.mxu1  ;;  %v315_v60 = vpop.f32.mrf.mxu2 }
  0xb1   : > { %481 = vrot.lane.b32.xlu1 %v420_v42, %s694_s30 }
  0xb2   : > { %v294_v5 = vpop.f32.mrf.mxu0 }
  0xb6   : > { %v447_v45 = vpop.f32.mrf.mxu3 }
  0xb7   : > { %483 = vrot.lane.b32.xlu2 %v423_v44, %s694_s30  ;;  %499 = vrot.lane.b32.xlu0 %v447_v45, %s694_s30 }
  0xb8   : > { %v426_v46 = vpop.f32.mrf.mxu1  ;;  %v318_v3 = vpop.f32.mrf.mxu2 }
  0xba   : > { %v297_v13 = vpop.f32.mrf.mxu0 }
  0xbe   : > { %v450_v47 = vpop.f32.mrf.mxu3 }
  0xbf   : > { %485 = vrot.lane.b32.xlu2 %v426_v46, %s694_s30 }
  0xc0   : > { %v429_v48 = vpop.f32.mrf.mxu1  ;;  %v321_v12 = vpop.f32.mrf.mxu2 }
  0xc1   : > { %487 = vrot.lane.b32.xlu0 %v429_v48, %s694_s30 }
  0xc2   : > { %v300_v25 = vpop.f32.mrf.mxu0 }
  0xc6   : > { %v453_v49 = vpop.f32.mrf.mxu3 }
  0xc7   : > { %503 = vrot.lane.b32.xlu2 %v453_v49, %s694_s30 }
  0xc8   : > { %v432_v50 = vpop.f32.mrf.mxu1  ;;  %v324_v18 = vpop.f32.mrf.mxu2 }
  0xc9   : > { %489 = vrot.lane.b32.xlu1 %v432_v50, %s694_s30 }
  0xca   : > { %v303_v28 = vpop.f32.mrf.mxu0 }
  0xce   : > { %v456_v51 = vpop.f32.mrf.mxu3 }
  0xcf   : > { %505 = vrot.lane.b32.xlu0 %v456_v51, %s694_s30 }
  0xd0   : > { %v327_v31 = vpop.f32.mrf.mxu2 }
  0xd1   : > { %501 = vrot.lane.b32.xlu1 %v450_v47, %s694_s30 }
  0xf1   : > { %v492_v56 = vpop.permute.xlu2 %491 }
  0xf2   : > { %v532_v57 = vsel %vm523_vm1, %v306_v52, %v492_v56 }
  0xf3   : > { %548 = vst [vmem:[%s833_s6 + $0x40] sm:$0xff] %v532_v57 }
 0x103   : > { %v476_v61 = vpop.permute.xlu0 %475 }
 0x104   : > { %v524_v63 = vsel %vm523_vm1, %v282_v53, %v476_v61 }
 0x105   : > { %540 = vst [vmem:[%s833_s6] sm:$0xff] %v524_v63 }
 0x109   : > { %v498_v0 = vpop.permute.xlu2 %497 }
 0x10a   : > { %v535_v1 = vsel %vm523_vm1, %v315_v60, %v498_v0 }
 0x10b   : > { %v478_v2 = vpop.permute.xlu0 %477  ;;  %551 = vst [vmem:[%s833_s6 + $0x58] sm:$0xff] %v535_v1 }
 0x10c   : > { %v525_v4 = vsel %vm523_vm1, %v285_v55, %v478_v2 }
 0x10d   : > { %541 = vst [vmem:[%s833_s6 + $0x8] sm:$0xff] %v525_v4 }
 0x111   : > { %v484_v6 = vpop.permute.xlu2 %483 }
 0x112   : > { %v528_v7 = vsel %vm523_vm1, %v294_v5, %v484_v6 }
 0x113   : > { %544 = vst [vmem:[%s833_s6 + $0x20] sm:$0xff] %v528_v7  ;;  %v494_v8 = vpop.permute.xlu0 %493  ;;  %v480_v9 = vpop.permute.xlu1 %479 }
 0x114   : > { %v533_v10 = vsel %vm523_vm1, %v309_v54, %v494_v8  ;;  %v526_v11 = vsel %vm523_vm1, %v288_v59, %v480_v9 }
 0x115   : > { %549 = vst [vmem:[%s833_s6 + $0x48] sm:$0xff] %v533_v10 }
 0x116   : > { %542 = vst [vmem:[%s833_s6 + $0x10] sm:$0xff] %v526_v11 }
 0x119   : > { %v486_v14 = vpop.permute.xlu2 %485 }
 0x11a   : > { %v529_v15 = vsel %vm523_vm1, %v297_v13, %v486_v14 }
 0x11b   : > { %545 = vst [vmem:[%s833_s6 + $0x28] sm:$0xff] %v529_v15  ;;  %v496_v16 = vpop.permute.xlu1 %495 }
 0x11c   : > { %v534_v17 = vsel %vm523_vm1, %v312_v58, %v496_v16 }
 0x11d   : > { %550 = vst [vmem:[%s833_s6 + $0x50] sm:$0xff] %v534_v17 }
 0x121   : > { %v504_v19 = vpop.permute.xlu2 %503 }
 0x122   : > { %v538_v20 = vsel %vm523_vm1, %v324_v18, %v504_v19 }
 0x123   : > { %v482_v21 = vpop.permute.xlu1 %481  ;;  %554 = vst [vmem:[%s833_s6 + $0x70] sm:$0xff] %v538_v20 }
 0x124   : > { %v527_v22 = vsel %vm523_vm1, %v291_v62, %v482_v21 }
 0x125   : > { %543 = vst [vmem:[%s833_s6 + $0x18] sm:$0xff] %v527_v22 }
 0x129   : > { %v500_v23 = vpop.permute.xlu0 %499 }
 0x12a   : > { %v536_v24 = vsel %vm523_vm1, %v318_v3, %v500_v23 }
 0x12b   : > { %552 = vst [vmem:[%s833_s6 + $0x60] sm:$0xff] %v536_v24 }
 0x133   : > { %v488_v26 = vpop.permute.xlu0 %487 }
 0x134   : > { %v530_v27 = vsel %vm523_vm1, %v300_v25, %v488_v26 }
 0x135   : > { %546 = vst [vmem:[%s833_s6 + $0x30] sm:$0xff] %v530_v27 }
 0x13b   : > { %v490_v29 = vpop.permute.xlu1 %489 }
 0x13c   : > { %v531_v30 = vsel %vm523_vm1, %v303_v28, %v490_v29 }
 0x13d   : > { %547 = vst [vmem:[%s833_s6 + $0x38] sm:$0xff] %v531_v30 }
 0x141   : > { %v506_v32 = vpop.permute.xlu0 %505 }
 0x142   : > { %v539_v33 = vsel %vm523_vm1, %v327_v31, %v506_v32 }
 0x143   : > { %v502_v34 = vpop.permute.xlu1 %501  ;;  %555 = vst [vmem:[%s833_s6 + $0x78] sm:$0xff] %v539_v33 }
 0x144   : > { %v537_v35 = vsel %vm523_vm1, %v321_v12, %v502_v34 }
 0x145   : > { %553 = vst [vmem:[%s833_s6 + $0x68] sm:$0xff] %v537_v35 }
 0x146 PF: > { %s13_s12 = sadd.s32 1, %s692_s12  }
 0x147   : > { %p10_p4 = scmp.ge.s32.totalorder %s13_s12, 4  }
 0x149   :  { %12 = sbr.rel (!%p10_p4) target bundleno = 1 (0x1), region = 65 }

// kernel: dgi_forward.5
= control target key start
LH: loop header
LB: loop body
LE: loop exit
PB: predicated region body
PF: predicated region fallthrough
CT: control target
= control target key end

     0   :  { %s702_s0 = inlined_call_operand.<no memory space> [shape: f32[1], index: 0, kind: input, shape index: {}]   ;;  %s703_s1 = inlined_call_operand.vmem [shape: f32[16,64], index: 1, kind: input, shape index: {}]   ;;  %s704_s2 = inlined_call_operand.vmem [shape: f32[64,64], index: 2, kind: input, shape index: {}]   ;;  %s705_s3 = inlined_call_operand.vmem [shape: f32[128,256], index: 3, kind: input, shape index: {}]   ;;  %s706_s4 = inlined_call_operand.vmem [shape: f32[2,256], index: 4, kind: output, shape index: {}]  }
   0x1   :  { %9 = sst [smem:[#allocation2]] %s702_s0 }
   0x2   :  { %s577_s17 = smov 0   ;;  %s579_s18 = smov 0  }
   0x3   :  { %s581_s19 = smov 0  }
   0x4 LB: > { %s482_s0 = sadd.s32 4294967295, %s547_s19   ;;  %s594_s20 = sadd.s32 1, %s547_s19   ;;  %s547_s19 = sphi %s581_s19, %s709_s19   ;;  %s543_s18 = sphi %s579_s18, %s708_s18   ;;  %s539_s17 = sphi %s577_s17, %s707_s17  }
   0x5   : > { %s82_s21 = ssub.s32 %s547_s19, %s594_s20  ;;  %s85_s22 = sadd.s32 1, %s543_s18 }
   0x6   : > { %p83_p0 = scmp.eq.s32.totalorder %s82_s21, 0  ;;  %p92_p1 = scmp.ne.s32.totalorder %s543_s18, %s539_s17 }
   0x7   : > { %p93_p2 = scmp.eq.s32.totalorder %s547_s19, 0  ;;  %p485_p4 = scmp.ge.s32.totalorder %s547_s19, 2 }
   0x8   : > { %s603_s23 = scalar_select %p83_p0, %s543_s18, %s85_s22  }
   0x9   : > { %p94_p3 = por %p93_p2, %p92_p1  ;;  %153 = sbr.rel (%p485_p4) target bundleno = 34 (0x22), region = 28 }
   0xe   : > { %156 = sbr.rel (!%p94_p3) target bundleno = 34 (0x22), region = 32  ;;  %s158_s24 = sand.u32 (%p94_p3), 1, %s543_s18  }
   0xf   : > { %s487_s25 = sshll.u32 (%p94_p3), %s547_s19, 3  ;;  %s486_s26 = sshll.u32 (%p94_p3), %s158_s24, 7 }
  0x10   : > { %s611_s29 = scalar_lea.vmem (%p94_p3), %s705_s3, %s487_s25  ;;  %s160_s30 = scalar_lea.vmem (%p94_p3), [#allocation3], %s486_s26 }
  0x11   : > { %v221_v0 = vld [vmem:[%s611_s29] sm:$0xff] (%p94_p3)  ;;  %v223_v1 = vld [vmem:[%s611_s29 + $0x10] sm:$0xff] (%p94_p3) }
  0x12   : > { %v225_v2 = vld [vmem:[%s611_s29 + $0x20] sm:$0xff] (%p94_p3)  ;;  %222 = vst [vmem:[%s160_s30] sm:$0xff] (%p94_p3), %v221_v0  ;;  %v227_v3 = vld [vmem:[%s611_s29 + $0x30] sm:$0xff] (%p94_p3) }
  0x13   : > { %224 = vst [vmem:[%s160_s30 + $0x8] sm:$0xff] %v223_v1  ;;  %v229_v4 = vld [vmem:[%s611_s29 + $0x40] sm:$0xff]  ;;  %v231_v5 = vld [vmem:[%s611_s29 + $0x50] sm:$0xff] }
  0x14   : > { %226 = vst [vmem:[%s160_s30 + $0x10] sm:$0xff] %v225_v2  ;;  %v233_v6 = vld [vmem:[%s611_s29 + $0x60] sm:$0xff]  ;;  %v235_v7 = vld [vmem:[%s611_s29 + $0x70] sm:$0xff] }
  0x15   : > { %228 = vst [vmem:[%s160_s30 + $0x18] sm:$0xff] %v227_v3  ;;  %v237_v8 = vld [vmem:[%s611_s29 + $0x80] sm:$0xff]  ;;  %v239_v9 = vld [vmem:[%s611_s29 + $0x90] sm:$0xff] }
  0x16   : > { %230 = vst [vmem:[%s160_s30 + $0x20] sm:$0xff] %v229_v4  ;;  %v241_v10 = vld [vmem:[%s611_s29 + $0xa0] sm:$0xff]  ;;  %v243_v11 = vld [vmem:[%s611_s29 + $0xb0] sm:$0xff] }
  0x17   : > { %232 = vst [vmem:[%s160_s30 + $0x28] sm:$0xff] %v231_v5  ;;  %v245_v12 = vld [vmem:[%s611_s29 + $0xc0] sm:$0xff]  ;;  %v247_v13 = vld [vmem:[%s611_s29 + $0xd0] sm:$0xff] }
  0x18   : > { %234 = vst [vmem:[%s160_s30 + $0x30] sm:$0xff] %v233_v6  ;;  %v249_v14 = vld [vmem:[%s611_s29 + $0xe0] sm:$0xff]  ;;  %v251_v15 = vld [vmem:[%s611_s29 + $0xf0] sm:$0xff] }
  0x19   : > { %236 = vst [vmem:[%s160_s30 + $0x38] sm:$0xff] %v235_v7 }
  0x1a   : > { %238 = vst [vmem:[%s160_s30 + $0x40] sm:$0xff] %v237_v8 }
  0x1b   : > { %240 = vst [vmem:[%s160_s30 + $0x48] sm:$0xff] %v239_v9 }
  0x1c   : > { %242 = vst [vmem:[%s160_s30 + $0x50] sm:$0xff] %v241_v10 }
  0x1d   : > { %244 = vst [vmem:[%s160_s30 + $0x58] sm:$0xff] %v243_v11 }
  0x1e   : > { %246 = vst [vmem:[%s160_s30 + $0x60] sm:$0xff] %v245_v12 }
  0x1f   : > { %248 = vst [vmem:[%s160_s30 + $0x68] sm:$0xff] %v247_v13 }
  0x20   : > { %250 = vst [vmem:[%s160_s30 + $0x70] sm:$0xff] %v249_v14 }
  0x21   : > { %252 = vst [vmem:[%s160_s30 + $0x78] sm:$0xff] %v251_v15 }
  0x22 PF: > { %p488_p5 = scmp.ge.s32.totalorder %s547_s19, 1  ;;  %p257_p6 = scmp.lt.s32.totalorder %s547_s19, 3 }
  0x24   : > { %p258_p7 = pnand %p488_p5, %p257_p6 }
  0x25   : > { %s264_s26 = sand.u32 (!%p258_p7), 1, %s539_s17   ;;  %p288_p8 = scmp.lt.s32.totalorder (!%p258_p7), %s482_s0, 1 }
  0x26   : > { %261 = sbr.rel (%p258_p7) target bundleno = 354 (0x162), region = 70  ;;  %s489_s29 = sshll.u32 (!%p258_p7), %s264_s26, 7 }
  0x27   : > { %s664_s6 = scalar_lea.vmem (!%p258_p7), [#allocation3], %s489_s29  ;;  %s419_s17 = sld [smem:[#allocation2]] (!%p258_p7) }
  0x2b   : > { %v331_v16 = vld [vmem:[%s704_s2 + $0x38] sm:$0xff]  ;;  %v330_v17 = vld [vmem:[%s704_s2 + $0x30] sm:$0xff]  ;;  %vm294_vm0 = vcmask 523264   ;;  %v329_v18 = vld [vmem:[%s704_s2 + $0x28] sm:$0xff]  ;;  %s711_s0 = smov (!%p288_p8, %s482_s0), 1  ;;  %vm417_vm5 = vcmask 1040384  }
  0x2c   : > { %343 = vmatpush.msra.mxu0 %v331_v16  ;;  %v292_v19 = vld [vmem:[%s703_s1] sm:$0xff]  ;;  %v293_v20 = vld [vmem:[%s703_s1 + $0x8] sm:$0xff]  ;;  %v327_v25 = vld [vmem:[%s704_s2 + $0x18] sm:$0xff]  ;;  %s490_s7 = sshll.u32 %s711_s0, 1 }
  0x2d   : > { %v295_v21 = vsel %vm294_vm0, %v292_v19, 0.0  ;;  %v328_v22 = vld [vmem:[%s704_s2 + $0x20] sm:$0xff]  ;;  %v296_v23 = vsel %vm294_vm0, %v293_v20, 0.0  ;;  %v326_v27 = vld [vmem:[%s704_s2 + $0x10] sm:$0xff]  ;;  %v325_v29 = vld [vmem:[%s704_s2 + $0x8] sm:$0xff]  ;;  %v420_v4 = vstv %s419_s17  ;;  %s291_s10 = scalar_lea.vmem %s706_s4, %s490_s7 }
  0x2e   : > { %344 = vmatpush.msra.mxu0 %v330_v17  ;;  %v297_v24 = vadd.f32 %v296_v23, %v295_v21  ;;  %v324_v31 = vld [vmem:[%s704_s2] sm:$0xff]  ;;  %v362_v35 = vld [vmem:[%s664_s6 + $0x38] sm:$0xff]  ;;  %v361_v37 = vld [vmem:[%s664_s6 + $0x30] sm:$0xff] }
  0x2f   : > { %v370_v36 = vld [vmem:[%s664_s6 + $0x78] sm:$0xff]  ;;  %382 = vmatpush.msra.mxu1 %v362_v35  ;;  %v369_v38 = vld [vmem:[%s664_s6 + $0x70] sm:$0xff]  ;;  %v360_v40 = vld [vmem:[%s664_s6 + $0x28] sm:$0xff] }
  0x30   : > { %345 = vmatpush.msra.mxu0 %v329_v18  ;;  %v298_v26 = vrot.slane %v297_v24, 4  ;;  %402 = vmatpush.msra.mxu2 %v370_v36  ;;  %v368_v41 = vld [vmem:[%s664_s6 + $0x68] sm:$0xff]  ;;  %v359_v43 = vld [vmem:[%s664_s6 + $0x20] sm:$0xff]  ;;  %v358_v45 = vld [vmem:[%s664_s6 + $0x18] sm:$0xff] }
  0x31   : > { %383 = vmatpush.msra.mxu1 %v361_v37  ;;  %v367_v44 = vld [vmem:[%s664_s6 + $0x60] sm:$0xff]  ;;  %v366_v46 = vld [vmem:[%s664_s6 + $0x58] sm:$0xff]  ;;  %v357_v47 = vld [vmem:[%s664_s6 + $0x10] sm:$0xff] }
  0x32   : > { %346 = vmatpush.msra.mxu0 %v328_v22  ;;  %v299_v28 = vadd.f32 %v298_v26, %v297_v24  ;;  %403 = vmatpush.msra.mxu2 %v369_v38  ;;  %v365_v48 = vld [vmem:[%s664_s6 + $0x50] sm:$0xff]  ;;  %v356_v49 = vld [vmem:[%s664_s6 + $0x8] sm:$0xff]  ;;  %v355_v63 = vld [vmem:[%s664_s6] sm:$0xff] }
  0x33   : > { %384 = vmatpush.msra.mxu1 %v360_v40  ;;  %v364_v50 = vld [vmem:[%s664_s6 + $0x48] sm:$0xff]  ;;  %v363_v0 = vld [vmem:[%s664_s6 + $0x40] sm:$0xff] }
  0x34   : > { %347 = vmatpush.msra.mxu0 %v327_v25  ;;  %v300_v30 = vrot.slane %v299_v28, 2  ;;  %404 = vmatpush.msra.mxu2 %v368_v41 }
  0x35   : > { %385 = vmatpush.msra.mxu1 %v359_v43 }
  0x36   : > { %348 = vmatpush.msra.mxu0 %v326_v27  ;;  %v301_v32 = vadd.f32 %v300_v30, %v299_v28  ;;  %405 = vmatpush.msra.mxu2 %v367_v44 }
  0x37   : > { %386 = vmatpush.msra.mxu1 %v358_v45 }
  0x38   : > { %349 = vmatpush.msra.mxu0 %v325_v29  ;;  %v302_v33 = vrot.slane %v301_v32, 1  ;;  %406 = vmatpush.msra.mxu2 %v366_v46 }
  0x39   : > { %387 = vmatpush.msra.mxu1 %v357_v47 }
  0x3a   : > { %350 = vmatpush.msra.mxu0 %v324_v31  ;;  %v303_v34 = vadd.f32 %v302_v33, %v301_v32  ;;  %407 = vmatpush.msra.mxu2 %v365_v48 }
  0x3b   : > { %388 = vmatpush.msra.mxu1 %v356_v49 }
  0x3c   : > { %v491_v39 = vmul.f32 -0.00048828125, %v303_v34  ;;  %408 = vmatpush.msra.mxu2 %v364_v50 }
  0x3d   : > { %389 = vmatpush.msra.mxu1 %v355_v63 }
  0x3e   : > { %v306_v42 = vmul.f32 1.442695, %v491_v39  ;;  %409 = vmatpush.msra.mxu2 %v363_v0 }
  0x40   : > { %521 = vpow2.f32 %v306_v42 }
  0x46   : > { %v522_v51 = vpop.eup %521 }
  0x47   : > { %v308_v52 = vadd.f32 1.0, %v522_v51 }
  0x49   : > { %523 = vrcp.f32 %v308_v52  ;;  %v320_v55 = vand.u32 2147483648, %v308_v52  ;;  %vm314_vm1 = vweird.f32 %v308_v52  ;;  %v318_v57 = vand.u32 2147483647, %v308_v52 }
  0x4b   : > { %v321_v59 = vor.u32 1.1754944e-38, %v320_v55  ;;  %vm319_vm4 = vcmp.eq.f32.partialorder %v318_v57, 8.507059e+37 }
  0x4f   : > { %v524_v53 = vpop.eup %523 }
  0x50   : > { %v310_v54 = vmul.f32 %v524_v53, %v308_v52  ;;  %vm315_vm2 = vweird.f32 %v524_v53 }
  0x51   : > { %vm316_vm3 = vmor %vm314_vm1, %vm315_vm2 }
  0x52   : > { %v311_v56 = vsub.f32 1.0, %v310_v54 }
  0x54   : > { %v312_v58 = vmul.f32 %v524_v53, %v311_v56 }
  0x56   : > { %v313_v60 = vadd.f32 %v524_v53, %v312_v58 }
  0x58   : > { %v317_v61 = vsel %vm316_vm3, %v524_v53, %v313_v60 }
  0x59   : > { %v322_v62 = vsel %vm319_vm4, %v321_v59, %v317_v61 }
  0x5a   : > { %492 = vmatmul.msk.f32.vlgmr.msra.gmra.mxu0 %vm294_vm0, %v322_v62 }
  0xd7   : > { %v352_v1 = vpop.f32.mrf.mxu0 }
  0xd8   : > { %493 = vmatmul.msk.f32.vlgmr.msra.gmra.mxu1 %vm294_vm0, %v352_v1  ;;  %494 = vmatmul.msk.f32.vlgmr.msra.gmra.mxu2 %vm294_vm0, %v352_v1 }
 0x155   : > { %v391_v5 = vpop.f32.mrf.mxu1 }
 0x15b   : > { %v411_v2 = vpop.f32.mrf.mxu2 }
 0x15c   : > { %v415_v3 = vrot.slane %v411_v2, 7 }
 0x15e   : > { %v418_v6 = vsel %vm417_vm5, %v391_v5, %v415_v3 }
 0x15f   : > { %v421_v7 = vadd.f32 %v420_v4, %v418_v6 }
 0x161   : > { %422 = vst [vmem:[%s291_s10] sm:$0x3] %v421_v7 }
 0x162 PF: > { %p12_p9 = scmp.ge.s32.totalorder %s594_s20, 4   ;;  %s707_s17 = smov %s543_s18 }
 0x163   : > { %s708_s18 = smov %s603_s23  ;;  %s709_s19 = smov %s594_s20 }
 0x164   :  { %14 = sbr.rel (!%p12_p9) target bundleno = 4 (0x4), region = 109 }

</bundles_post_ra>
